<compile_context>
chip_gen: v5e
topology: v5e:2x2
jax: 0.10.0
libtpu: 0.0.40
codegen_flags: <defaults>
</compile_context>

<pallas_src>
import functools

import jax
import jax.numpy as jnp
from jax.experimental import pallas as pl
from jax.experimental.pallas import tpu as pltpu


def _round_up(n, m):
    return (n + m - 1) // m * m


def _cdiv(a, b):
    return (a + b - 1) // b


def _tpu_kind():
    try:
        return (jax.devices()[0].device_kind or "").lower()
    except Exception:
        return ""


def _is_v6_or_newer():
    kind = _tpu_kind()
    return any(tag in kind for tag in ("v6", "v7", "7x"))


def _default_bf16_act(activation):
    # bf16 EUP exists on v6e/v7x; keep f32 transcendentals on v5e / unknown.
    return activation == "sigmoid" and _is_v6_or_newer()


def _vmem_capacity_bytes():
    try:
        return int(pltpu.get_tpu_info().vmem_capacity_bytes)
    except Exception:
        return 64 * 2 ** 20  # conservative fallback: v7x has 64 MiB per TC


def _mlp_kernel(*refs, num_hidden_layers, activation, bf16_act):
    """One batch tile of the fused MLP forward (all operands resident in VMEM)."""
    if num_hidden_layers > 0:
        x_ref, w_in_ref, b_all_ref, wh_ref, w_out_ref, b_out_ref, o_ref = refs
    else:
        x_ref, w_in_ref, b_all_ref, w_out_ref, b_out_ref, o_ref = refs
        wh_ref = None

    def act(v):
        if activation == "relu":
            return jnp.maximum(v, 0.0)
        # sigmoid(x) == 0.5 * (tanh(0.5 x) + 1): exactly one EUP transcendental.
        if bf16_act:
            t = jnp.tanh((0.5 * v).astype(jnp.bfloat16)).astype(jnp.float32)
        else:
            t = jnp.tanh(0.5 * v)
        return 0.5 * (t + 1.0)

    # Input layer: bf16 MXU matmul, f32 accumulation, f32 bias + activation.
    x = x_ref[...].astype(jnp.bfloat16)                                     # (TB, F)
    h = jnp.dot(x, w_in_ref[...], preferred_element_type=jnp.float32)       # (TB, Hp)
    h = act(h + b_all_ref[0])                                               # bias (1, Hp)

    # Hidden layers (static unroll; num_hidden_layers is compile-time constant).
    for l in range(num_hidden_layers):
        h = jnp.dot(h.astype(jnp.bfloat16), wh_ref[l],
                    preferred_element_type=jnp.float32)
        h = act(h + b_all_ref[l + 1])

    # Output layer (out_features == 1, no activation): VPU multiply + lane
    # reduction instead of a 1-column MXU matmul; lane-dense (1, 1, TB) store.
    out = jnp.sum(h * w_out_ref[...], axis=-1)                              # (TB,)
    out = out + b_out_ref[0]                                                # SMEM scalar bias
    # TODO(synk): (TB,) -> (1,1,TB) is a sublane->lane relayout; only worth
    # buffering multiple tiles in scratch if a bundle dump shows XLU on the
    # critical path.
    o_ref[...] = out[None, None, :].astype(o_ref.dtype)


def mlp_forward(x, params, *, activation="relu", block_batch=4096, bf16_act=None):
    """x: (batch, num_inputs) f32. params use [in, out] weight layout (see init_params)."""
    w_in, b_in, wh, bh, w_out, b_out = params
    num_hidden_layers = wh.shape[0]
    batch, num_inputs = x.shape
    hidden = w_in.shape[1]
    if bf16_act is None:
        bf16_act = _default_bf16_act(activation)

    # ---- pad hidden width to the 128-lane width (zero padding is exact) -----
    hp = _round_up(hidden, 128)
    ph = hp - hidden
    w_in_p = jnp.pad(w_in, ((0, 0), (0, ph))).astype(jnp.bfloat16)            # (F, Hp)
    b_all = jnp.concatenate(
        [jnp.pad(b_in, ((0, 0), (0, ph)))[None],
         jnp.pad(bh, ((0, 0), (0, 0), (0, ph)))],
        axis=0).astype(jnp.float32)                                           # (L+1, 1, Hp)
    w_out_row = jnp.pad(w_out.reshape(1, hidden), ((0, 0), (0, ph)))          # (1, Hp) f32
    b_out_s = b_out.reshape(1).astype(jnp.float32)                            # (1,) -> SMEM
    if num_hidden_layers > 0:
        wh_p = jnp.pad(wh, ((0, 0), (0, ph), (0, ph))).astype(jnp.bfloat16)   # (L, Hp, Hp)
        wh_bytes = wh_p.size * 2
    else:
        wh_p = None                      # skip the dummy DMA entirely for L == 0
        wh_bytes = 0
    weight_bytes = (w_in_p.size * 2 + wh_bytes
                    + b_all.size * 4 + w_out_row.size * 4)

    # Pre-cast x to bf16 only when F is large (halves the only per-step stream).
    if num_inputs >= 256:
        x = x.astype(jnp.bfloat16)
    x_itemsize = jnp.dtype(x.dtype).itemsize

    # ---- batch tiling -------------------------------------------------------
    vmem_cap = int(0.85 * _vmem_capacity_bytes())
    min_tile = 256 if _is_v6_or_newer() else 128          # MXU M cadence

    def tile_bytes(t):
        return (2 * t * num_inputs * x_itemsize            # double-buffered x tile
                + 2 * t * 4                                 # double-buffered (1,1,t) out
                + t * hp * (4 + 4 + 2))                     # f32 h, f32 temps, bf16 copy

    rounded_batch = _round_up(batch, min_tile)
    tb_cap = max(min_tile, min(_round_up(block_batch, min_tile), rounded_batch))
    # Shrink the tile until (conservatively double-buffered) weights + tiles fit.
    while tb_cap > min_tile and 2 * weight_bytes + tile_bytes(tb_cap) > vmem_cap:
        tb_cap = max(min_tile, _round_up(tb_cap // 2, min_tile))

    grid = _cdiv(rounded_batch, tb_cap)
    if grid == 1 and rounded_batch >= 2 * min_tile:
        grid = 2        # keep >=2 steps so the "parallel" axis can use both TCs (v7x)
    tb = _round_up(_cdiv(rounded_batch, grid), min_tile)
    padded_batch = tb * grid

    x_p = jnp.pad(x, ((0, padded_batch - batch), (0, 0))) if padded_batch != batch else x

    kernel = functools.partial(
        _mlp_kernel,
        num_hidden_layers=num_hidden_layers,
        activation=activation,
        bf16_act=bf16_act,
    )

    def run(single_buffer):
        weight_bufs = 1 if single_buffer else 2
        vmem_limit = int(min(vmem_cap,
                             max(32 * 2 ** 20,
                                 2 * (weight_bufs * weight_bytes + tile_bytes(tb)))))

        def wspec(shape, index_map):
            # Constant index_map -> single buffer is enough (no re-fetch per step).
            if single_buffer:
                return pl.BlockSpec(shape, index_map, pipeline_mode=pl.Buffered(1))
            return pl.BlockSpec(shape, index_map)

        in_specs = [
            pl.BlockSpec((tb, num_inputs), lambda i: (i, 0)),                    # x tile
            wspec((num_inputs, hp), lambda i: (0, 0)),                           # w_in
            wspec((num_hidden_layers + 1, 1, hp), lambda i: (0, 0, 0)),          # biases
        ]
        args = [x_p, w_in_p, b_all]
        if num_hidden_layers > 0:
            in_specs.append(wspec((num_hidden_layers, hp, hp), lambda i: (0, 0, 0)))
            args.append(wh_p)
        in_specs += [
            wspec((1, hp), lambda i: (0, 0)),                                    # w_out row
            pl.BlockSpec(memory_space=pltpu.MemorySpace.SMEM),                   # b_out scalar
        ]
        args += [w_out_row, b_out_s]

        out = pl.pallas_call(
            kernel,
            out_shape=jax.ShapeDtypeStruct((grid, 1, tb), jnp.float32),
            grid=(grid,),
            in_specs=in_specs,
            out_specs=pl.BlockSpec((1, 1, tb), lambda i: (i, 0, 0)),             # lane-dense out
            compiler_params=pltpu.CompilerParams(
                dimension_semantics=("parallel",),
                vmem_limit_bytes=vmem_limit,
            ),
        )(*args)
        return jax.block_until_ready(out)

    try:
        out = run(single_buffer=True)
    except Exception:
        # pl.Buffered(1) not supported on this jax/Mosaic build: fall back to
        # default double-buffered specs (previously verified configuration).
        out = run(single_buffer=False)

    return out.reshape(padded_batch, 1)[:batch]


def init_params(key, num_inputs, num_hidden_layers, nodes_per_hidden_layer):
    """Deterministic synthetic init (uniform, like PyTorch's default scale).

    Weights are stored as [in_features, out_features] (transpose of nn.Linear).
    """
    ks = jax.random.split(key, 6)
    h = nodes_per_hidden_layer

    def u(k, shape, fan_in):
        bound = 1.0 / jnp.sqrt(jnp.float32(fan_in))
        return jax.random.uniform(k, shape, jnp.float32, -bound, bound)

    w_in = u(ks[0], (num_inputs, h), num_inputs)
    b_in = u(ks[1], (1, h), num_inputs)
    wh = u(ks[2], (num_hidden_layers, h, h), h)
    bh = u(ks[3], (num_hidden_layers, 1, h), h)
    w_out = u(ks[4], (h, 1), h)
    b_out = u(ks[5], (1, 1), h)
    return (w_in, b_in, wh, bh, w_out, b_out)


def mlp_reference(x, params, *, activation="relu"):
    """Pure-f32 JAX reference matching the PyTorch forward."""
    w_in, b_in, wh, bh, w_out, b_out = params
    act = (lambda v: jnp.maximum(v, 0.0)) if activation == "relu" else jax.nn.sigmoid
    h = act(x @ w_in + b_in)
    for l in range(wh.shape[0]):
        h = act(h @ wh[l] + bh[l])
    return h @ w_out + b_out


def mlp_reference_bf16(x, params, *, activation="relu", bf16_act=False):
    """Reference mirroring the kernel's numerics (bf16 matmuls, tanh-form sigmoid)."""
    w_in, b_in, wh, bh, w_out, b_out = params

    def act(v):
        if activation == "relu":
            return jnp.maximum(v, 0.0)
        if bf16_act:
            t = jnp.tanh((0.5 * v).astype(jnp.bfloat16)).astype(jnp.float32)
        else:
            t = jnp.tanh(0.5 * v)
        return 0.5 * (t + 1.0)

    h = jnp.dot(x.astype(jnp.bfloat16), w_in.astype(jnp.bfloat16),
                preferred_element_type=jnp.float32)
    h = act(h + b_in)
    for l in range(wh.shape[0]):
        h = jnp.dot(h.astype(jnp.bfloat16), wh[l].astype(jnp.bfloat16),
                    preferred_element_type=jnp.float32)
        h = act(h + bh[l])
    return jnp.sum(h * w_out.reshape(1, -1), axis=-1, keepdims=True) + b_out


if __name__ == "__main__":
    key = jax.random.PRNGKey(0)

    configs = [
        # (num_inputs, num_hidden_layers, nodes_per_hidden_layer, output_type, batch)
        (16, 2, 32, "relu", 8),
        (16, 2, 32, "sigmoid", 10),   # non-multiple-of-8 batch exercises padding path
        (16, 2, 32, "relu", 300),     # exercises multi-tile grid / megacore split
    ]
    for num_inputs, num_hidden_layers, nodes, output_type, batch in configs:
        key, k_x, k_p = jax.random.split(key, 3)
        x = jax.random.normal(k_x, (batch, num_inputs), jnp.float32)
        params = init_params(k_p, num_inputs, num_hidden_layers, nodes)

        bf16_flag = _default_bf16_act(output_type)
        out = jax.block_until_ready(
            mlp_forward(x, params, activation=output_type, bf16_act=bf16_flag))
        assert out.shape == (batch, 1), out.shape

        ref_bf16 = mlp_reference_bf16(x, params, activation=output_type,
                                      bf16_act=bf16_flag)
        ref_f32 = mlp_reference(x, params, activation=output_type)
        tol = 2e-2 if bf16_flag else 2e-3
        assert jnp.allclose(out, ref_bf16, atol=tol, rtol=tol), \
            "Pallas output mismatch vs bf16-matched reference"
        assert jnp.allclose(out, ref_f32, atol=5e-2, rtol=5e-2), \
            "Pallas output mismatch vs f32 reference"

    print("KERNEL_OK")
</pallas_src>

<mosaic_0001>
module attributes {stable_mosaic.version = 11 : i64} {
  func.func @_mlp_kernel(%arg0: i32, %arg1: memref<128x16xf32, #tpu.memory_space<vmem>>, %arg2: memref<16x128xbf16, #tpu.memory_space<vmem>>, %arg3: memref<3x1x128xf32, #tpu.memory_space<vmem>>, %arg4: memref<2x128x128xbf16, #tpu.memory_space<vmem>>, %arg5: memref<1x128xf32, #tpu.memory_space<vmem>>, %arg6: memref<1xf32, #tpu.memory_space<smem>>, %arg7: memref<1x1x128xf32, #tpu.memory_space<vmem>>) attributes {dimension_semantics = [#tpu.dimension_semantics<parallel>], iteration_bounds = array<i64: 1>, scalar_prefetch = 0 : i64, scratch_operands = 0 : i64, tpu.core_type = #tpu.core_type<tc>, window_params = [{transform_indices = @transform_0, window_bounds = array<i64: 128, 16>}, {pipeline_mode = #tpu.pipeline_mode<synchronous>, transform_indices = @transform_1, window_bounds = array<i64: 16, 128>}, {pipeline_mode = #tpu.pipeline_mode<synchronous>, transform_indices = @transform_2, window_bounds = array<i64: 3, 1, 128>}, {pipeline_mode = #tpu.pipeline_mode<synchronous>, transform_indices = @transform_3, window_bounds = array<i64: 2, 128, 128>}, {pipeline_mode = #tpu.pipeline_mode<synchronous>, transform_indices = @transform_4, window_bounds = array<i64: 1, 128>}, {transform_indices = @transform_5, window_bounds = array<i64: 1>}, {transform_indices = @transform_6, window_bounds = array<i64: 1, 1, 128>}]} {
    %c0 = arith.constant 0 : index
    %c0_0 = arith.constant 0 : index
    %0 = vector.load %arg1[%c0, %c0_0] : memref<128x16xf32, #tpu.memory_space<vmem>>, vector<128x16xf32>
    %1 = arith.truncf %0 : vector<128x16xf32> to vector<128x16xbf16>
    %c0_1 = arith.constant 0 : index
    %c0_2 = arith.constant 0 : index
    %2 = vector.load %arg2[%c0_1, %c0_2] : memref<16x128xbf16, #tpu.memory_space<vmem>>, vector<16x128xbf16>
    %cst = arith.constant dense<0.000000e+00> : vector<128x128xf32>
    %3 = tpu.matmul %1, %2, %cst {dimension_numbers = #tpu.dot_dimension_numbers<[1], [0], [0], [1], [0, 0, 1, 1], [], []>} : vector<128x16xbf16>, vector<16x128xbf16>, vector<128x128xf32> -> vector<128x128xf32>
    %c0_3 = arith.constant 0 : index
    %c0_4 = arith.constant 0 : index
    %c0_5 = arith.constant 0 : index
    %4 = vector.load %arg3[%c0_3, %c0_4, %c0_5] : memref<3x1x128xf32, #tpu.memory_space<vmem>>, vector<1x1x128xf32>
    %5 = vector.shape_cast %4 : vector<1x1x128xf32> to vector<1x128xf32>
    %6 = vector.broadcast %5 : vector<1x128xf32> to vector<128x128xf32>
    %7 = arith.addf %3, %6 : vector<128x128xf32>
    %cst_6 = arith.constant 0.000000e+00 : f32
    %8 = vector.broadcast %cst_6 : f32 to vector<128x128xf32>
    %9 = arith.maximumf %7, %8 : vector<128x128xf32>
    %10 = arith.truncf %9 : vector<128x128xf32> to vector<128x128xbf16>
    %c0_7 = arith.constant 0 : index
    %c0_8 = arith.constant 0 : index
    %c0_9 = arith.constant 0 : index
    %11 = vector.load %arg4[%c0_7, %c0_8, %c0_9] : memref<2x128x128xbf16, #tpu.memory_space<vmem>>, vector<1x128x128xbf16>
    %12 = vector.shape_cast %11 : vector<1x128x128xbf16> to vector<128x128xbf16>
    %cst_10 = arith.constant dense<0.000000e+00> : vector<128x128xf32>
    %13 = tpu.matmul %10, %12, %cst_10 {dimension_numbers = #tpu.dot_dimension_numbers<[1], [0], [0], [1], [0, 0, 1, 1], [], []>} : vector<128x128xbf16>, vector<128x128xbf16>, vector<128x128xf32> -> vector<128x128xf32>
    %c1 = arith.constant 1 : index
    %c0_11 = arith.constant 0 : index
    %c0_12 = arith.constant 0 : index
    %14 = vector.load %arg3[%c1, %c0_11, %c0_12] : memref<3x1x128xf32, #tpu.memory_space<vmem>>, vector<1x1x128xf32>
    %15 = vector.shape_cast %14 : vector<1x1x128xf32> to vector<1x128xf32>
    %16 = vector.broadcast %15 : vector<1x128xf32> to vector<128x128xf32>
    %17 = arith.addf %13, %16 : vector<128x128xf32>
    %cst_13 = arith.constant 0.000000e+00 : f32
    %18 = vector.broadcast %cst_13 : f32 to vector<128x128xf32>
    %19 = arith.maximumf %17, %18 : vector<128x128xf32>
    %20 = arith.truncf %19 : vector<128x128xf32> to vector<128x128xbf16>
    %c1_14 = arith.constant 1 : index
    %c0_15 = arith.constant 0 : index
    %c0_16 = arith.constant 0 : index
    %21 = vector.load %arg4[%c1_14, %c0_15, %c0_16] : memref<2x128x128xbf16, #tpu.memory_space<vmem>>, vector<1x128x128xbf16>
    %22 = vector.shape_cast %21 : vector<1x128x128xbf16> to vector<128x128xbf16>
    %cst_17 = arith.constant dense<0.000000e+00> : vector<128x128xf32>
    %23 = tpu.matmul %20, %22, %cst_17 {dimension_numbers = #tpu.dot_dimension_numbers<[1], [0], [0], [1], [0, 0, 1, 1], [], []>} : vector<128x128xbf16>, vector<128x128xbf16>, vector<128x128xf32> -> vector<128x128xf32>
    %c2 = arith.constant 2 : index
    %c0_18 = arith.constant 0 : index
    %c0_19 = arith.constant 0 : index
    %24 = vector.load %arg3[%c2, %c0_18, %c0_19] : memref<3x1x128xf32, #tpu.memory_space<vmem>>, vector<1x1x128xf32>
    %25 = vector.shape_cast %24 : vector<1x1x128xf32> to vector<1x128xf32>
    %26 = vector.broadcast %25 : vector<1x128xf32> to vector<128x128xf32>
    %27 = arith.addf %23, %26 : vector<128x128xf32>
    %cst_20 = arith.constant 0.000000e+00 : f32
    %28 = vector.broadcast %cst_20 : f32 to vector<128x128xf32>
    %29 = arith.maximumf %27, %28 : vector<128x128xf32>
    %c0_21 = arith.constant 0 : index
    %c0_22 = arith.constant 0 : index
    %30 = vector.load %arg5[%c0_21, %c0_22] : memref<1x128xf32, #tpu.memory_space<vmem>>, vector<1x128xf32>
    %31 = vector.broadcast %30 : vector<1x128xf32> to vector<128x128xf32>
    %32 = arith.mulf %29, %31 : vector<128x128xf32>
    %cst_23 = arith.constant dense<0.000000e+00> : vector<128xf32>
    %33 = vector.multi_reduction <add>, %32, %cst_23 [1] : vector<128x128xf32> to vector<128xf32>
    %c0_24 = arith.constant 0 : index
    %34 = memref.load %arg6[%c0_24] : memref<1xf32, #tpu.memory_space<smem>>
    %35 = vector.broadcast %34 : f32 to vector<128xf32>
    %36 = arith.addf %33, %35 : vector<128xf32>
    %37 = vector.shape_cast %36 : vector<128xf32> to vector<1x1x128xf32>
    %c0_25 = arith.constant 0 : index
    %c0_26 = arith.constant 0 : index
    %c0_27 = arith.constant 0 : index
    %38 = vector.load %arg7[%c0_25, %c0_26, %c0_27] : memref<1x1x128xf32, #tpu.memory_space<vmem>>, vector<1x1x128xf32>
    tpu.vector_store %arg7[%c0_25, %c0_26, %c0_27], %37 {strides = array<i32>} : memref<1x1x128xf32, #tpu.memory_space<vmem>>, vector<1x1x128xf32>,
    return
  }
  func.func @transform_0(%arg0: i32) -> (i32, i32) {
    %c0_i32 = arith.constant 0 : i32
    %c0_i32_0 = arith.constant 0 : i32
    return %arg0, %c0_i32 : i32, i32
  }
  func.func @transform_1(%arg0: i32) -> (i32, i32) {
    %c0_i32 = arith.constant 0 : i32
    %c0_i32_0 = arith.constant 0 : i32
    %c0_i32_1 = arith.constant 0 : i32
    return %c0_i32, %c0_i32_0 : i32, i32
  }
  func.func @transform_2(%arg0: i32) -> (i32, i32, i32) {
    %c0_i32 = arith.constant 0 : i32
    %c0_i32_0 = arith.constant 0 : i32
    %c0_i32_1 = arith.constant 0 : i32
    %c0_i32_2 = arith.constant 0 : i32
    return %c0_i32, %c0_i32_0, %c0_i32_1 : i32, i32, i32
  }
  func.func @transform_3(%arg0: i32) -> (i32, i32, i32) {
    %c0_i32 = arith.constant 0 : i32
    %c0_i32_0 = arith.constant 0 : i32
    %c0_i32_1 = arith.constant 0 : i32
    %c0_i32_2 = arith.constant 0 : i32
    return %c0_i32, %c0_i32_0, %c0_i32_1 : i32, i32, i32
  }
  func.func @transform_4(%arg0: i32) -> (i32, i32) {
    %c0_i32 = arith.constant 0 : i32
    %c0_i32_0 = arith.constant 0 : i32
    %c0_i32_1 = arith.constant 0 : i32
    return %c0_i32, %c0_i32_0 : i32, i32
  }
  func.func @transform_5(%arg0: i32) -> i32 {
    %c0_i32 = arith.constant 0 : i32
    %c0_i32_0 = arith.constant 0 : i32
    return %c0_i32 : i32
  }
  func.func @transform_6(%arg0: i32) -> (i32, i32, i32) {
    %c0_i32 = arith.constant 0 : i32
    %c0_i32_0 = arith.constant 0 : i32
    %c0_i32_1 = arith.constant 0 : i32
    return %arg0, %c0_i32, %c0_i32_0 : i32, i32, i32
  }
}

module attributes {stable_mosaic.version = 11 : i64} {
  func.func @_mlp_kernel(%arg0: i32, %arg1: memref<128x16xf32, #tpu.memory_space<vmem>>, %arg2: memref<16x128xbf16, #tpu.memory_space<vmem>>, %arg3: memref<3x1x128xf32, #tpu.memory_space<vmem>>, %arg4: memref<2x128x128xbf16, #tpu.memory_space<vmem>>, %arg5: memref<1x128xf32, #tpu.memory_space<vmem>>, %arg6: memref<1xf32, #tpu.memory_space<smem>>, %arg7: memref<1x1x128xf32, #tpu.memory_space<vmem>>) attributes {dimension_semantics = [#tpu.dimension_semantics<parallel>], iteration_bounds = array<i64: 1>, scalar_prefetch = 0 : i64, scratch_operands = 0 : i64, tpu.core_type = #tpu.core_type<tc>, window_params = [{transform_indices = @transform_0, window_bounds = array<i64: 128, 16>}, {pipeline_mode = #tpu.pipeline_mode<synchronous>, transform_indices = @transform_1, window_bounds = array<i64: 16, 128>}, {pipeline_mode = #tpu.pipeline_mode<synchronous>, transform_indices = @transform_2, window_bounds = array<i64: 3, 1, 128>}, {pipeline_mode = #tpu.pipeline_mode<synchronous>, transform_indices = @transform_3, window_bounds = array<i64: 2, 128, 128>}, {pipeline_mode = #tpu.pipeline_mode<synchronous>, transform_indices = @transform_4, window_bounds = array<i64: 1, 128>}, {transform_indices = @transform_5, window_bounds = array<i64: 1>}, {transform_indices = @transform_6, window_bounds = array<i64: 1, 1, 128>}]} {
    %c0 = arith.constant 0 : index
    %c0_0 = arith.constant 0 : index
    %0 = vector.load %arg1[%c0, %c0_0] : memref<128x16xf32, #tpu.memory_space<vmem>>, vector<128x16xf32>
    %1 = arith.truncf %0 : vector<128x16xf32> to vector<128x16xbf16>
    %c0_1 = arith.constant 0 : index
    %c0_2 = arith.constant 0 : index
    %2 = vector.load %arg2[%c0_1, %c0_2] : memref<16x128xbf16, #tpu.memory_space<vmem>>, vector<16x128xbf16>
    %cst = arith.constant dense<0.000000e+00> : vector<128x128xf32>
    %3 = tpu.matmul %1, %2, %cst {dimension_numbers = #tpu.dot_dimension_numbers<[1], [0], [0], [1], [0, 0, 1, 1], [], []>} : vector<128x16xbf16>, vector<16x128xbf16>, vector<128x128xf32> -> vector<128x128xf32>
    %c0_3 = arith.constant 0 : index
    %c0_4 = arith.constant 0 : index
    %c0_5 = arith.constant 0 : index
    %4 = vector.load %arg3[%c0_3, %c0_4, %c0_5] : memref<3x1x128xf32, #tpu.memory_space<vmem>>, vector<1x1x128xf32>
    %5 = vector.shape_cast %4 : vector<1x1x128xf32> to vector<1x128xf32>
    %6 = vector.broadcast %5 : vector<1x128xf32> to vector<128x128xf32>
    %7 = arith.addf %3, %6 : vector<128x128xf32>
    %cst_6 = arith.constant 0.000000e+00 : f32
    %8 = vector.broadcast %cst_6 : f32 to vector<128x128xf32>
    %9 = arith.maximumf %7, %8 : vector<128x128xf32>
    %10 = arith.truncf %9 : vector<128x128xf32> to vector<128x128xbf16>
    %c0_7 = arith.constant 0 : index
    %c0_8 = arith.constant 0 : index
    %c0_9 = arith.constant 0 : index
    %11 = vector.load %arg4[%c0_7, %c0_8, %c0_9] : memref<2x128x128xbf16, #tpu.memory_space<vmem>>, vector<1x128x128xbf16>
    %12 = vector.shape_cast %11 : vector<1x128x128xbf16> to vector<128x128xbf16>
    %cst_10 = arith.constant dense<0.000000e+00> : vector<128x128xf32>
    %13 = tpu.matmul %10, %12, %cst_10 {dimension_numbers = #tpu.dot_dimension_numbers<[1], [0], [0], [1], [0, 0, 1, 1], [], []>} : vector<128x128xbf16>, vector<128x128xbf16>, vector<128x128xf32> -> vector<128x128xf32>
    %c1 = arith.constant 1 : index
    %c0_11 = arith.constant 0 : index
    %c0_12 = arith.constant 0 : index
    %14 = vector.load %arg3[%c1, %c0_11, %c0_12] : memref<3x1x128xf32, #tpu.memory_space<vmem>>, vector<1x1x128xf32>
    %15 = vector.shape_cast %14 : vector<1x1x128xf32> to vector<1x128xf32>
    %16 = vector.broadcast %15 : vector<1x128xf32> to vector<128x128xf32>
    %17 = arith.addf %13, %16 : vector<128x128xf32>
    %cst_13 = arith.constant 0.000000e+00 : f32
    %18 = vector.broadcast %cst_13 : f32 to vector<128x128xf32>
    %19 = arith.maximumf %17, %18 : vector<128x128xf32>
    %20 = arith.truncf %19 : vector<128x128xf32> to vector<128x128xbf16>
    %c1_14 = arith.constant 1 : index
    %c0_15 = arith.constant 0 : index
    %c0_16 = arith.constant 0 : index
    %21 = vector.load %arg4[%c1_14, %c0_15, %c0_16] : memref<2x128x128xbf16, #tpu.memory_space<vmem>>, vector<1x128x128xbf16>
    %22 = vector.shape_cast %21 : vector<1x128x128xbf16> to vector<128x128xbf16>
    %cst_17 = arith.constant dense<0.000000e+00> : vector<128x128xf32>
    %23 = tpu.matmul %20, %22, %cst_17 {dimension_numbers = #tpu.dot_dimension_numbers<[1], [0], [0], [1], [0, 0, 1, 1], [], []>} : vector<128x128xbf16>, vector<128x128xbf16>, vector<128x128xf32> -> vector<128x128xf32>
    %c2 = arith.constant 2 : index
    %c0_18 = arith.constant 0 : index
    %c0_19 = arith.constant 0 : index
    %24 = vector.load %arg3[%c2, %c0_18, %c0_19] : memref<3x1x128xf32, #tpu.memory_space<vmem>>, vector<1x1x128xf32>
    %25 = vector.shape_cast %24 : vector<1x1x128xf32> to vector<1x128xf32>
    %26 = vector.broadcast %25 : vector<1x128xf32> to vector<128x128xf32>
    %27 = arith.addf %23, %26 : vector<128x128xf32>
    %cst_20 = arith.constant 0.000000e+00 : f32
    %28 = vector.broadcast %cst_20 : f32 to vector<128x128xf32>
    %29 = arith.maximumf %27, %28 : vector<128x128xf32>
    %c0_21 = arith.constant 0 : index
    %c0_22 = arith.constant 0 : index
    %30 = vector.load %arg5[%c0_21, %c0_22] : memref<1x128xf32, #tpu.memory_space<vmem>>, vector<1x128xf32>
    %31 = vector.broadcast %30 : vector<1x128xf32> to vector<128x128xf32>
    %32 = arith.mulf %29, %31 : vector<128x128xf32>
    %cst_23 = arith.constant dense<0.000000e+00> : vector<128xf32>
    %33 = vector.multi_reduction <add>, %32, %cst_23 [1] : vector<128x128xf32> to vector<128xf32>
    %c0_24 = arith.constant 0 : index
    %34 = memref.load %arg6[%c0_24] : memref<1xf32, #tpu.memory_space<smem>>
    %35 = vector.broadcast %34 : f32 to vector<128xf32>
    %36 = arith.addf %33, %35 : vector<128xf32>
    %37 = vector.shape_cast %36 : vector<128xf32> to vector<1x1x128xf32>
    %c0_25 = arith.constant 0 : index
    %c0_26 = arith.constant 0 : index
    %c0_27 = arith.constant 0 : index
    %38 = vector.load %arg7[%c0_25, %c0_26, %c0_27] : memref<1x1x128xf32, #tpu.memory_space<vmem>>, vector<1x1x128xf32>
    tpu.vector_store %arg7[%c0_25, %c0_26, %c0_27], %37 {strides = array<i32>} : memref<1x1x128xf32, #tpu.memory_space<vmem>>, vector<1x1x128xf32>,
    return
  }
  func.func @transform_0(%arg0: i32) -> (i32, i32) {
    %c0_i32 = arith.constant 0 : i32
    %c0_i32_0 = arith.constant 0 : i32
    return %arg0, %c0_i32 : i32, i32
  }
  func.func @transform_1(%arg0: i32) -> (i32, i32) {
    %c0_i32 = arith.constant 0 : i32
    %c0_i32_0 = arith.constant 0 : i32
    %c0_i32_1 = arith.constant 0 : i32
    return %c0_i32, %c0_i32_0 : i32, i32
  }
  func.func @transform_2(%arg0: i32) -> (i32, i32, i32) {
    %c0_i32 = arith.constant 0 : i32
    %c0_i32_0 = arith.constant 0 : i32
    %c0_i32_1 = arith.constant 0 : i32
    %c0_i32_2 = arith.constant 0 : i32
    return %c0_i32, %c0_i32_0, %c0_i32_1 : i32, i32, i32
  }
  func.func @transform_3(%arg0: i32) -> (i32, i32, i32) {
    %c0_i32 = arith.constant 0 : i32
    %c0_i32_0 = arith.constant 0 : i32
    %c0_i32_1 = arith.constant 0 : i32
    %c0_i32_2 = arith.constant 0 : i32
    return %c0_i32, %c0_i32_0, %c0_i32_1 : i32, i32, i32
  }
  func.func @transform_4(%arg0: i32) -> (i32, i32) {
    %c0_i32 = arith.constant 0 : i32
    %c0_i32_0 = arith.constant 0 : i32
    %c0_i32_1 = arith.constant 0 : i32
    return %c0_i32, %c0_i32_0 : i32, i32
  }
  func.func @transform_5(%arg0: i32) -> i32 {
    %c0_i32 = arith.constant 0 : i32
    %c0_i32_0 = arith.constant 0 : i32
    return %c0_i32 : i32
  }
  func.func @transform_6(%arg0: i32) -> (i32, i32, i32) {
    %c0_i32 = arith.constant 0 : i32
    %c0_i32_0 = arith.constant 0 : i32
    %c0_i32_1 = arith.constant 0 : i32
    return %arg0, %c0_i32, %c0_i32_0 : i32, i32, i32
  }
}

</mosaic_0001>

<bundles_post_ra>
// kernel: tpu_custom_call.1
= control target key start
LH: loop header
LB: loop body
LE: loop exit
PB: predicated region body
PF: predicated region fallthrough
CT: control target
= control target key end

     0   :  { %vm62_vm0 = vcmask 130048   ;;  %s1020_s0 = inlined_call_operand.vmem [shape: f32[128,16], index: 0, kind: input, shape index: {}]   ;;  %s1021_s1 = inlined_call_operand.vmem [shape: bf16[16,128], index: 1, kind: input, shape index: {}]   ;;  %s1022_s2 = inlined_call_operand.vmem [shape: f32[3,1,128], index: 2, kind: input, shape index: {}]   ;;  %s1023_s3 = inlined_call_operand.vmem [shape: bf16[2,128,128], index: 3, kind: input, shape index: {}]   ;;  %s1024_s4 = inlined_call_operand.vmem [shape: f32[1,128], index: 4, kind: input, shape index: {}]   ;;  %s1025_s5 = inlined_call_operand.<no memory space> [shape: f32[1], index: 5, kind: input, shape index: {}]   ;;  %s1026_s6 = inlined_call_operand.hbm [shape: f32[1,1,128], index: 6, kind: output, shape index: {}]  }
   0x1   :  { %v698_v0 = vld [vmem:[%s1021_s1] sm:$0xff]  ;;  %v27_v2 = vld [vmem:[%s1020_s0 + $0x8] sm:$0xff] }
   0x2   :  { %v26_v1 = vld [vmem:[%s1020_s0] sm:$0xff]  ;;  %94 = vmatpush.bf16.msra.mxu0 %v698_v0 }
   0x3   :  { %v42_v3 = vpack.c.bf16 %v27_v2, %v26_v1 }
   0x4   :  { %12 = vsyncpa [#allocation4], 0  ;;  %v28_v4 = vld [vmem:[%s1020_s0 + $0x10] sm:$0xff]  ;;  %v29_v5 = vld [vmem:[%s1020_s0 + $0x18] sm:$0xff]  ;;  %vm528_vm1 = vcmask 130112   ;;  %vm532_vm2 = vcmask 195712  }
   0x5   :  { %608 = vmatmul.msk.bf16.vlgmr.msra.gmra.mxu0 %vm62_vm0, %v42_v3  ;;  %v43_v6 = vpack.c.bf16 %v29_v5, %v28_v4  ;;  %v30_v7 = vld [vmem:[%s1020_s0 + $0x20] sm:$0xff]  ;;  %v31_v8 = vld [vmem:[%s1020_s0 + $0x28] sm:$0xff]  ;;  %v32_v10 = vld [vmem:[%s1020_s0 + $0x30] sm:$0xff]  ;;  %vm536_vm3 = vcmask 261312   ;;  %vm540_vm4 = vcmask 326912   ;;  %vm544_vm5 = vcmask 392512  }
   0x6   :  { %v44_v9 = vpack.c.bf16 %v31_v8, %v30_v7  ;;  %v33_v11 = vld [vmem:[%s1020_s0 + $0x38] sm:$0xff]  ;;  %v34_v13 = vld [vmem:[%s1020_s0 + $0x40] sm:$0xff]  ;;  %v35_v14 = vld [vmem:[%s1020_s0 + $0x48] sm:$0xff]  ;;  %vm548_vm6 = vcmask 458112   ;;  %vm552_vm7 = vcmask 523712   ;;  %vm556_vm8 = vcmask 589312  }
   0x7   :  { %v45_v12 = vpack.c.bf16 %v33_v11, %v32_v10  ;;  %v46_v15 = vpack.c.bf16 %v35_v14, %v34_v13  ;;  %v706_v16 = vld [vmem:[%s1023_s3 + $0x38] sm:$0xff]  ;;  %v36_v17 = vld [vmem:[%s1020_s0 + $0x50] sm:$0xff]  ;;  %v704_v21 = vld [vmem:[%s1023_s3 + $0x28] sm:$0xff]  ;;  %vm560_vm9 = vcmask 654912   ;;  %vm564_vm10 = vcmask 720512   ;;  %s595_s21 = sshll.u32 %s1026_s6, 4  ;;  %s596_s21 = int_to_ptr.hbm [resolvable:$true] %s595_s21 }
   0x8   :  { %229 = vmatpush.bf16.msra.mxu1 %v706_v16  ;;  %715 = vmatpush.bf16.msra.mxu3 %v706_v16  ;;  %v37_v18 = vld [vmem:[%s1020_s0 + $0x58] sm:$0xff]  ;;  %v705_v20 = vld [vmem:[%s1023_s3 + $0x30] sm:$0xff]  ;;  %v703_v22 = vld [vmem:[%s1023_s3 + $0x20] sm:$0xff]  ;;  %vm568_vm11 = vcmask 786112   ;;  %vm572_vm12 = vcmask 851712   ;;  %vm576_vm13 = vcmask 917312  }
   0x9   :  { %v47_v19 = vpack.c.bf16 %v37_v18, %v36_v17  ;;  %v38_v23 = vld [vmem:[%s1020_s0 + $0x60] sm:$0xff]  ;;  %v39_v24 = vld [vmem:[%s1020_s0 + $0x68] sm:$0xff]  ;;  %v702_v25 = vld [vmem:[%s1023_s3 + $0x18] sm:$0xff]  ;;  %vm580_vm14 = vcmask 982912   ;;  %vm584_vm15 = vcmask 1048512  }
   0xa   :  { %v48_v26 = vpack.c.bf16 %v39_v24, %v38_v23  ;;  %v701_v27 = vld [vmem:[%s1023_s3 + $0x10] sm:$0xff]  ;;  %v700_v28 = vld [vmem:[%s1023_s3 + $0x8] sm:$0xff]  ;;  %v699_v29 = vld [vmem:[%s1023_s3] sm:$0xff] }
   0xb   :  { %v40_v30 = vld [vmem:[%s1020_s0 + $0x70] sm:$0xff]  ;;  %v41_v31 = vld [vmem:[%s1020_s0 + $0x78] sm:$0xff]  ;;  %v884_v34 = vld [vmem:[%s1022_s2] ss:$0 sm:$0xff] }
   0xc   :  { %230 = vmatpush.bf16.msra.mxu1 %v705_v20  ;;  %716 = vmatpush.bf16.msra.mxu3 %v705_v20  ;;  %v49_v32 = vpack.c.bf16 %v41_v31, %v40_v30  ;;  %v713_v13 = vld [vmem:[%s1023_s3 + $0x70] sm:$0xff]  ;;  %v711_v16 = vld [vmem:[%s1023_s3 + $0x60] sm:$0xff]  ;;  %v710_v20 = vld [vmem:[%s1023_s3 + $0x58] sm:$0xff] }
   0xd   :  { %v709_v24 = vld [vmem:[%s1023_s3 + $0x50] sm:$0xff] }
  0x10   :  { %231 = vmatpush.bf16.msra.mxu1 %v704_v21  ;;  %717 = vmatpush.bf16.msra.mxu3 %v704_v21 }
  0x14   :  { %232 = vmatpush.bf16.msra.mxu1 %v703_v22  ;;  %718 = vmatpush.bf16.msra.mxu3 %v703_v22 }
  0x15   :  { %609 = vmatmul.msk.bf16.gmra.mxu0 %vm62_vm0, %v43_v6 }
  0x18   :  { %233 = vmatpush.bf16.msra.mxu1 %v702_v25  ;;  %719 = vmatpush.bf16.msra.mxu3 %v702_v25 }
  0x1c   :  { %234 = vmatpush.bf16.msra.mxu1 %v701_v27  ;;  %720 = vmatpush.bf16.msra.mxu3 %v701_v27  ;;  %v707_v27 = vld [vmem:[%s1023_s3 + $0x40] sm:$0xff] }
  0x20   :  { %235 = vmatpush.bf16.msra.mxu1 %v700_v28  ;;  %721 = vmatpush.bf16.msra.mxu3 %v700_v28 }
  0x24   :  { %236 = vmatpush.bf16.msra.mxu1 %v699_v29  ;;  %722 = vmatpush.bf16.msra.mxu3 %v699_v29 }
  0x25   :  { %610 = vmatmul.msk.bf16.gmra.mxu0 %vm62_vm0, %v44_v9  ;;  %v714_v9 = vld [vmem:[%s1023_s3 + $0x78] sm:$0xff] }
  0x26   :  { %372 = vmatpush.bf16.msra.mxu2 %v714_v9 }
  0x28   :  { %723 = vmatpush.bf16.msrb.mxu3 %v714_v9 }
  0x2a   :  { %373 = vmatpush.bf16.msra.mxu2 %v713_v13 }
  0x2c   :  { %724 = vmatpush.bf16.msrb.mxu3 %v713_v13 }
  0x35   :  { %611 = vmatmul.msk.bf16.gmra.mxu0 %vm62_vm0, %v45_v12 }
  0x45   :  { %612 = vmatmul.msk.bf16.gmra.mxu0 %vm62_vm0, %v46_v15  ;;  %v712_v15 = vld [vmem:[%s1023_s3 + $0x68] sm:$0xff] }
  0x46   :  { %374 = vmatpush.bf16.msra.mxu2 %v712_v15  ;;  %725 = vmatpush.bf16.msrb.mxu3 %v712_v15 }
  0x4a   :  { %375 = vmatpush.bf16.msra.mxu2 %v711_v16  ;;  %726 = vmatpush.bf16.msrb.mxu3 %v711_v16 }
  0x4e   :  { %376 = vmatpush.bf16.msra.mxu2 %v710_v20  ;;  %727 = vmatpush.bf16.msrb.mxu3 %v710_v20 }
  0x52   :  { %377 = vmatpush.bf16.msra.mxu2 %v709_v24  ;;  %728 = vmatpush.bf16.msrb.mxu3 %v709_v24 }
  0x55   :  { %613 = vmatmul.msk.bf16.gmra.mxu0 %vm62_vm0, %v47_v19 }
  0x65   :  { %614 = vmatmul.msk.bf16.gmra.mxu0 %vm62_vm0, %v48_v26  ;;  %v708_v26 = vld [vmem:[%s1023_s3 + $0x48] sm:$0xff] }
  0x66   :  { %378 = vmatpush.bf16.msra.mxu2 %v708_v26  ;;  %729 = vmatpush.bf16.msrb.mxu3 %v708_v26 }
  0x6a   :  { %379 = vmatpush.bf16.msra.mxu2 %v707_v27  ;;  %730 = vmatpush.bf16.msrb.mxu3 %v707_v27  ;;  %v932_v27 = vld [vmem:[%s1022_s2 + $0x2] ss:$0 sm:$0xff] }
  0x75   :  { %615 = vmatmul.msk.bf16.gmra.mxu0 %vm62_vm0, %v49_v32 }
  0x82   :  { %v96_v33 = vpop.f32.mrf.mxu0 }
  0x83   :  { %v97_v35 = vadd.f32 %v884_v34, %v96_v33 }
  0x85   :  { %v136_v38 = vmax.f32 %v97_v35, 0.0 }
  0x8a   :  { %v98_v36 = vpop.f32.mrf.mxu0 }
  0x8b   :  { %v99_v37 = vadd.f32 %v884_v34, %v98_v36  ;;  %v733_v36 = vld [vmem:[%s1022_s2 + $0x1] ss:$0 sm:$0xff] }
  0x8d   :  { %v137_v39 = vmax.f32 %v99_v37, 0.0 }
  0x8f   :  { %v152_v40 = vpack.c.bf16 %v137_v39, %v136_v38 }
  0x91   :  { %237 = vmatmul.bf16.vlgmr.msra.gmra.mxu1 %v152_v40 }
  0x92   :  { %v101_v41 = vpop.f32.mrf.mxu0 }
  0x93   :  { %v102_v42 = vadd.f32 %v884_v34, %v101_v41 }
  0x95   :  { %v138_v45 = vmax.f32 %v102_v42, 0.0 }
  0x9a   :  { %v103_v43 = vpop.f32.mrf.mxu0 }
  0x9b   :  { %v104_v44 = vadd.f32 %v884_v34, %v103_v43 }
  0x9d   :  { %v139_v46 = vmax.f32 %v104_v44, 0.0 }
  0x9f   :  { %v153_v47 = vpack.c.bf16 %v139_v46, %v138_v45 }
  0xa1   :  { %242 = vmatmul.bf16.gmra.mxu1 %v153_v47 }
  0xa2   :  { %v106_v48 = vpop.f32.mrf.mxu0 }
  0xa3   :  { %v107_v49 = vadd.f32 %v884_v34, %v106_v48 }
  0xa5   :  { %v140_v52 = vmax.f32 %v107_v49, 0.0 }
  0xaa   :  { %v108_v50 = vpop.f32.mrf.mxu0 }
  0xab   :  { %v109_v51 = vadd.f32 %v884_v34, %v108_v50 }
  0xad   :  { %v141_v53 = vmax.f32 %v109_v51, 0.0 }
  0xaf   :  { %v154_v54 = vpack.c.bf16 %v141_v53, %v140_v52 }
  0xb1   :  { %247 = vmatmul.bf16.gmra.mxu1 %v154_v54 }
  0xb2   :  { %v111_v55 = vpop.f32.mrf.mxu0 }
  0xb3   :  { %v112_v56 = vadd.f32 %v884_v34, %v111_v55 }
  0xb5   :  { %v142_v59 = vmax.f32 %v112_v56, 0.0 }
  0xba   :  { %v113_v57 = vpop.f32.mrf.mxu0 }
  0xbb   :  { %v114_v58 = vadd.f32 %v884_v34, %v113_v57 }
  0xbd   :  { %v143_v60 = vmax.f32 %v114_v58, 0.0 }
  0xbf   :  { %v155_v61 = vpack.c.bf16 %v143_v60, %v142_v59 }
  0xc1   :  { %252 = vmatmul.bf16.gmra.mxu1 %v155_v61 }
  0xc2   :  { %v116_v62 = vpop.f32.mrf.mxu0 }
  0xc3   :  { %v117_v63 = vadd.f32 %v884_v34, %v116_v62 }
  0xc5   :  { %v144_v2 = vmax.f32 %v117_v63, 0.0 }
  0xca   :  { %v118_v0 = vpop.f32.mrf.mxu0 }
  0xcb   :  { %v119_v1 = vadd.f32 %v884_v34, %v118_v0 }
  0xcd   :  { %v145_v3 = vmax.f32 %v119_v1, 0.0 }
  0xcf   :  { %v156_v4 = vpack.c.bf16 %v145_v3, %v144_v2 }
  0xd1   :  { %257 = vmatmul.bf16.gmra.mxu1 %v156_v4 }
  0xd2   :  { %v121_v5 = vpop.f32.mrf.mxu0 }
  0xd3   :  { %v122_v6 = vadd.f32 %v884_v34, %v121_v5 }
  0xd5   :  { %v146_v10 = vmax.f32 %v122_v6, 0.0 }
  0xda   :  { %v123_v7 = vpop.f32.mrf.mxu0 }
  0xdb   :  { %v124_v8 = vadd.f32 %v884_v34, %v123_v7 }
  0xdd   :  { %v147_v11 = vmax.f32 %v124_v8, 0.0 }
  0xdf   :  { %v157_v12 = vpack.c.bf16 %v147_v11, %v146_v10 }
  0xe1   :  { %262 = vmatmul.bf16.gmra.mxu1 %v157_v12 }
  0xe2   :  { %v126_v14 = vpop.f32.mrf.mxu0 }
  0xe3   :  { %v127_v17 = vadd.f32 %v884_v34, %v126_v14 }
  0xe5   :  { %v148_v21 = vmax.f32 %v127_v17, 0.0 }
  0xea   :  { %v128_v18 = vpop.f32.mrf.mxu0 }
  0xeb   :  { %v129_v19 = vadd.f32 %v884_v34, %v128_v18 }
  0xed   :  { %v149_v22 = vmax.f32 %v129_v19, 0.0 }
  0xef   :  { %v158_v23 = vpack.c.bf16 %v149_v22, %v148_v21 }
  0xf1   :  { %267 = vmatmul.bf16.vlgmr.msra.gmra.mxu3 %v158_v23 }
  0xf2   :  { %v131_v25 = vpop.f32.mrf.mxu0 }
  0xf3   :  { %v132_v28 = vadd.f32 %v884_v34, %v131_v25 }
  0xf5   :  { %v150_v31 = vmax.f32 %v132_v28, 0.0 }
  0xfa   :  { %v133_v29 = vpop.f32.mrf.mxu0 }
  0xfb   :  { %v134_v30 = vadd.f32 %v884_v34, %v133_v29 }
  0xfd   :  { %v151_v32 = vmax.f32 %v134_v30, 0.0  ;;  %v938_v30 = vld [vmem:[%s1024_s4] ss:$0 sm:$0xff] }
  0xff   :  { %v159_v33 = vpack.c.bf16 %v151_v32, %v150_v31 }
 0x101   :  { %272 = vmatmul.bf16.gmra.mxu3 %v159_v33 }
 0x10e   :  { %v238_v35 = vpop.f32.mrf.mxu1 }
 0x10f   :  { %v239_v37 = vadd.f32 %v733_v36, %v238_v35 }
 0x111   :  { %v278_v40 = vmax.f32 %v239_v37, 0.0 }
 0x116   :  { %v240_v38 = vpop.f32.mrf.mxu1 }
 0x117   :  { %v241_v39 = vadd.f32 %v733_v36, %v240_v38 }
 0x119   :  { %v279_v41 = vmax.f32 %v241_v39, 0.0 }
 0x11b   :  { %v294_v42 = vpack.c.bf16 %v279_v41, %v278_v40 }
 0x11d   :  { %380 = vmatmul.bf16.vlgmr.msra.gmra.mxu2 %v294_v42 }
 0x11e   :  { %v243_v43 = vpop.f32.mrf.mxu1 }
 0x11f   :  { %v244_v44 = vadd.f32 %v733_v36, %v243_v43 }
 0x121   :  { %v280_v46 = vmax.f32 %v244_v44, 0.0 }
 0x126   :  { %v245_v45 = vpop.f32.mrf.mxu1 }
 0x127   :  { %v246_v34 = vadd.f32 %v733_v36, %v245_v45 }
 0x129   :  { %v281_v47 = vmax.f32 %v246_v34, 0.0 }
 0x12b   :  { %v295_v48 = vpack.c.bf16 %v281_v47, %v280_v46 }
 0x12d   :  { %385 = vmatmul.bf16.gmra.mxu2 %v295_v48 }
 0x12e   :  { %v248_v49 = vpop.f32.mrf.mxu1 }
 0x12f   :  { %v249_v50 = vadd.f32 %v733_v36, %v248_v49 }
 0x131   :  { %v282_v53 = vmax.f32 %v249_v50, 0.0 }
 0x136   :  { %v250_v51 = vpop.f32.mrf.mxu1 }
 0x137   :  { %v251_v52 = vadd.f32 %v733_v36, %v250_v51 }
 0x139   :  { %v283_v54 = vmax.f32 %v251_v52, 0.0 }
 0x13b   :  { %v296_v55 = vpack.c.bf16 %v283_v54, %v282_v53 }
 0x13d   :  { %390 = vmatmul.bf16.gmra.mxu2 %v296_v55 }
 0x13e   :  { %v253_v56 = vpop.f32.mrf.mxu1 }
 0x13f   :  { %v254_v57 = vadd.f32 %v733_v36, %v253_v56 }
 0x141   :  { %v284_v60 = vmax.f32 %v254_v57, 0.0 }
 0x146   :  { %v255_v58 = vpop.f32.mrf.mxu1 }
 0x147   :  { %v256_v59 = vadd.f32 %v733_v36, %v255_v58 }
 0x149   :  { %v285_v61 = vmax.f32 %v256_v59, 0.0 }
 0x14b   :  { %v297_v62 = vpack.c.bf16 %v285_v61, %v284_v60 }
 0x14d   :  { %395 = vmatmul.bf16.gmra.mxu2 %v297_v62 }
 0x14e   :  { %v258_v63 = vpop.f32.mrf.mxu1 }
 0x14f   :  { %v259_v0 = vadd.f32 %v733_v36, %v258_v63 }
 0x151   :  { %v286_v3 = vmax.f32 %v259_v0, 0.0 }
 0x156   :  { %v260_v1 = vpop.f32.mrf.mxu1 }
 0x157   :  { %v261_v2 = vadd.f32 %v733_v36, %v260_v1 }
 0x159   :  { %v287_v4 = vmax.f32 %v261_v2, 0.0 }
 0x15b   :  { %v298_v5 = vpack.c.bf16 %v287_v4, %v286_v3 }
 0x15d   :  { %400 = vmatmul.bf16.gmra.mxu2 %v298_v5 }
 0x15e   :  { %v263_v6 = vpop.f32.mrf.mxu1 }
 0x15f   :  { %v264_v7 = vadd.f32 %v733_v36, %v263_v6 }
 0x161   :  { %v288_v10 = vmax.f32 %v264_v7, 0.0 }
 0x166   :  { %v265_v8 = vpop.f32.mrf.mxu1 }
 0x167   :  { %v266_v9 = vadd.f32 %v733_v36, %v265_v8 }
 0x169   :  { %v289_v11 = vmax.f32 %v266_v9, 0.0 }
 0x16b   :  { %v299_v12 = vpack.c.bf16 %v289_v11, %v288_v10 }
 0x16d   :  { %405 = vmatmul.bf16.gmra.mxu2 %v299_v12 }
 0x174   :  { %v268_v13 = vpop.f32.mrf.mxu3 }
 0x175   :  { %v269_v14 = vadd.f32 %v733_v36, %v268_v13 }
 0x177   :  { %v290_v17 = vmax.f32 %v269_v14, 0.0 }
 0x17c   :  { %v270_v15 = vpop.f32.mrf.mxu3 }
 0x17d   :  { %v271_v16 = vadd.f32 %v733_v36, %v270_v15 }
 0x17f   :  { %v291_v18 = vmax.f32 %v271_v16, 0.0 }
 0x181   :  { %v300_v19 = vpack.c.bf16 %v291_v18, %v290_v17 }
 0x183   :  { %410 = vmatmul.bf16.vlgmr.msrb.gmra.mxu3 %v300_v19 }
 0x184   :  { %v273_v20 = vpop.f32.mrf.mxu3 }
 0x185   :  { %v274_v21 = vadd.f32 %v733_v36, %v273_v20 }
 0x187   :  { %v292_v24 = vmax.f32 %v274_v21, 0.0 }
 0x18c   :  { %v275_v22 = vpop.f32.mrf.mxu3 }
 0x18d   :  { %v276_v23 = vadd.f32 %v733_v36, %v275_v22 }
 0x18f   :  { %v293_v25 = vmax.f32 %v276_v23, 0.0 }
 0x191   :  { %v301_v26 = vpack.c.bf16 %v293_v25, %v292_v24 }
 0x193   :  { %415 = vmatmul.bf16.gmra.mxu3 %v301_v26 }
 0x1a0   :  { %v381_v28 = vpop.f32.mrf.mxu2 }
 0x1a1   :  { %v382_v29 = vadd.f32 %v932_v27, %v381_v28 }
 0x1a3   :  { %v421_v31 = vmax.f32 %v382_v29, 0.0 }
 0x1a5   :  { %v441_v32 = vmul.f32 %v938_v30, %v421_v31 }
 0x1a7   :  { %457 = vadd.xlane.f32.xlu0 %v441_v32 }
 0x1a8   :  { %v383_v33 = vpop.f32.mrf.mxu2 }
 0x1a9   :  { %v384_v35 = vadd.f32 %v932_v27, %v383_v33 }
 0x1ab   :  { %v422_v36 = vmax.f32 %v384_v35, 0.0 }
 0x1ad   :  { %v442_v37 = vmul.f32 %v938_v30, %v422_v36 }
 0x1af   :  { %459 = vadd.xlane.f32.xlu0 %v442_v37 }
 0x1b0   :  { %v386_v38 = vpop.f32.mrf.mxu2 }
 0x1b1   :  { %v387_v39 = vadd.f32 %v932_v27, %v386_v38  ;;  %v523_v38 = vlaneseq }
 0x1b3   :  { %v423_v40 = vmax.f32 %v387_v39, 0.0 }
 0x1b5   :  { %v443_v41 = vmul.f32 %v938_v30, %v423_v40 }
 0x1b7   :  { %461 = vadd.xlane.f32.xlu1 %v443_v41 }
 0x1b8   :  { %v388_v42 = vpop.f32.mrf.mxu2 }
 0x1b9   :  { %v389_v43 = vadd.f32 %v932_v27, %v388_v42  ;;  %v971_v42 = vand.u32 127, %v523_v38 }
 0x1bb   :  { %v424_v44 = vmax.f32 %v389_v43, 0.0  ;;  %v582_v38 = vadd.s32 4294967176, %v971_v42 }
 0x1bd   :  { %v444_v45 = vmul.f32 %v938_v30, %v424_v44 }
 0x1bf   :  { %463 = vadd.xlane.f32.xlu1 %v444_v45  ;;  %v530_v45 = vadd.s32 4294967280, %v971_v42 }
 0x1c0   :  { %v391_v34 = vpop.f32.mrf.mxu2 }
 0x1c1   :  { %v392_v46 = vadd.f32 %v932_v27, %v391_v34 }
 0x1c3   :  { %v425_v47 = vmax.f32 %v392_v46, 0.0  ;;  %v534_v46 = vadd.s32 4294967272, %v971_v42 }
 0x1c5   :  { %v445_v48 = vmul.f32 %v938_v30, %v425_v47 }
 0x1c7   :  { %465 = vadd.xlane.f32.xlu2 %v445_v48 }
 0x1c8   :  { %v393_v49 = vpop.f32.mrf.mxu2 }
 0x1c9   :  { %v394_v50 = vadd.f32 %v932_v27, %v393_v49 }
 0x1cb   :  { %v426_v51 = vmax.f32 %v394_v50, 0.0 }
 0x1cd   :  { %v446_v52 = vmul.f32 %v938_v30, %v426_v51  ;;  %v538_v51 = vadd.s32 4294967264, %v971_v42 }
 0x1cf   :  { %467 = vadd.xlane.f32.xlu2 %v446_v52 }
 0x1d0   :  { %v396_v53 = vpop.f32.mrf.mxu2 }
 0x1d1   :  { %v397_v54 = vadd.f32 %v932_v27, %v396_v53 }
 0x1d3   :  { %v427_v55 = vmax.f32 %v397_v54, 0.0 }
 0x1d5   :  { %v447_v56 = vmul.f32 %v938_v30, %v427_v55 }
 0x1d7   :  { %469 = vadd.xlane.f32.xlu0 %v447_v56 }
 0x1d8   :  { %v398_v57 = vpop.f32.mrf.mxu2 }
 0x1d9   :  { %v399_v58 = vadd.f32 %v932_v27, %v398_v57  ;;  %v542_v57 = vadd.s32 4294967256, %v971_v42 }
 0x1db   :  { %v428_v59 = vmax.f32 %v399_v58, 0.0 }
 0x1dd   :  { %v448_v60 = vmul.f32 %v938_v30, %v428_v59 }
 0x1df   :  { %471 = vadd.xlane.f32.xlu1 %v448_v60  ;;  %v546_v60 = vadd.s32 4294967248, %v971_v42 }
 0x1e0   :  { %v401_v61 = vpop.f32.mrf.mxu2 }
 0x1e1   :  { %v402_v62 = vadd.f32 %v932_v27, %v401_v61 }
 0x1e3   :  { %v429_v63 = vmax.f32 %v402_v62, 0.0 }
 0x1e5   :  { %v449_v0 = vmul.f32 %v938_v30, %v429_v63  ;;  %v550_v63 = vadd.s32 4294967240, %v971_v42 }
 0x1e7   :  { %473 = vadd.xlane.f32.xlu2 %v449_v0 }
 0x1e8   :  { %v403_v1 = vpop.f32.mrf.mxu2 }
 0x1e9   :  { %v404_v2 = vadd.f32 %v932_v27, %v403_v1 }
 0x1eb   :  { %v430_v3 = vmax.f32 %v404_v2, 0.0  ;;  %v554_v2 = vadd.s32 4294967232, %v971_v42 }
 0x1ed   :  { %v450_v4 = vmul.f32 %v938_v30, %v430_v3 }
 0x1ef   :  { %475 = vadd.xlane.f32.xlu0 %v450_v4 }
 0x1f0   :  { %v406_v5 = vpop.f32.mrf.mxu2 }
 0x1f1   :  { %v407_v6 = vadd.f32 %v932_v27, %v406_v5 }
 0x1f3   :  { %v431_v7 = vmax.f32 %v407_v6, 0.0  ;;  %v558_v6 = vadd.s32 4294967224, %v971_v42 }
 0x1f5   :  { %v451_v8 = vmul.f32 %v938_v30, %v431_v7 }
 0x1f7   :  { %477 = vadd.xlane.f32.xlu1 %v451_v8 }
 0x1f8   :  { %v408_v9 = vpop.f32.mrf.mxu2 }
 0x1f9   :  { %v409_v10 = vadd.f32 %v932_v27, %v408_v9 }
 0x1fb   :  { %v432_v11 = vmax.f32 %v409_v10, 0.0  ;;  %v562_v10 = vadd.s32 4294967216, %v971_v42 }
 0x1fd   :  { %v452_v12 = vmul.f32 %v938_v30, %v432_v11 }
 0x1ff   :  { %479 = vadd.xlane.f32.xlu2 %v452_v12 }
 0x206   :  { %v411_v13 = vpop.f32.mrf.mxu3 }
 0x207   :  { %v412_v14 = vadd.f32 %v932_v27, %v411_v13 }
 0x209   :  { %v433_v15 = vmax.f32 %v412_v14, 0.0 }
 0x20b   :  { %v453_v16 = vmul.f32 %v938_v30, %v433_v15  ;;  %v566_v15 = vadd.s32 4294967208, %v971_v42 }
 0x20d   :  { %481 = vadd.xlane.f32.xlu0 %v453_v16 }
 0x20e   :  { %v413_v17 = vpop.f32.mrf.mxu3 }
 0x20f   :  { %v414_v18 = vadd.f32 %v932_v27, %v413_v17 }
 0x211   :  { %v434_v19 = vmax.f32 %v414_v18, 0.0 }
 0x213   :  { %v454_v20 = vmul.f32 %v938_v30, %v434_v19  ;;  %v570_v19 = vadd.s32 4294967200, %v971_v42 }
 0x215   :  { %483 = vadd.xlane.f32.xlu1 %v454_v20 }
 0x216   :  { %v416_v21 = vpop.f32.mrf.mxu3 }
 0x217   :  { %v417_v22 = vadd.f32 %v932_v27, %v416_v21 }
 0x219   :  { %v435_v23 = vmax.f32 %v417_v22, 0.0 }
 0x21a   :  { %v458_v31 = vpop.xlane.xlu0 %457 }
 0x21b   :  { %v455_v24 = vmul.f32 %v938_v30, %v435_v23  ;;  %v574_v23 = vadd.s32 4294967192, %v971_v42 }
 0x21d   :  { %485 = vadd.xlane.f32.xlu2 %v455_v24 }
 0x21e   :  { %v418_v25 = vpop.f32.mrf.mxu3 }
 0x21f   :  { %v419_v26 = vadd.f32 %v932_v27, %v418_v25  ;;  %v976_v27 = vstv %s1025_s5  ;;  %s762_s5 = smov [#allocation3]  }
 0x220   :  { %v491_v44 = vadd.f32 %v976_v27, %v458_v31  ;;  %s593_s18 = sshll.u32 %s762_s5, 4  ;;  %s594_s18 = int_to_ptr.vmem [resolvable:$true] %s593_s18 }
 0x221   :  { %v436_v28 = vmax.f32 %v419_v26, 0.0 }
 0x222   :  { %v460_v35 = vpop.xlane.xlu0 %459  ;;  %v525_v54 = vperm.slane %v491_v44, %v971_v42 }
 0x223   :  { %v456_v29 = vmul.f32 %v938_v30, %v436_v28  ;;  %v526_v30 = vadd.s32 4294967288, %v971_v42  ;;  %v492_v43 = vadd.f32 %v976_v27, %v460_v35  ;;  %v578_v28 = vadd.s32 4294967184, %v971_v42 }
 0x225   :  { %487 = vadd.xlane.f32.xlu0 %v456_v29  ;;  %v527_v49 = vperm.slane %v492_v43, %v526_v30 }
 0x227   :  { %v529_v59 = vsel %vm528_vm1, %v527_v49, %v525_v54 }
 0x22a   :  { %v462_v32 = vpop.xlane.xlu1 %461 }
 0x22b   :  { %v493_v34 = vadd.f32 %v976_v27, %v462_v32 }
 0x22d   :  { %v531_v55 = vperm.slane %v493_v34, %v530_v45 }
 0x22f   :  { %v533_v1 = vsel %vm532_vm2, %v531_v55, %v529_v59 }
 0x232   :  { %v464_v36 = vpop.xlane.xlu1 %463 }
 0x233   :  { %v494_v47 = vadd.f32 %v976_v27, %v464_v36 }
 0x235   :  { %v535_v56 = vperm.slane %v494_v47, %v534_v46 }
 0x237   :  { %v537_v4 = vsel %vm536_vm3, %v535_v56, %v533_v1 }
 0x23a   :  { %v466_v33 = vpop.xlane.xlu2 %465 }
 0x23b   :  { %v495_v52 = vadd.f32 %v976_v27, %v466_v33 }
 0x23d   :  { %v539_v62 = vperm.slane %v495_v52, %v538_v51 }
 0x23f   :  { %v541_v13 = vsel %vm540_vm4, %v539_v62, %v537_v4 }
 0x242   :  { %v468_v37 = vpop.xlane.xlu2 %467 }
 0x243   :  { %v496_v58 = vadd.f32 %v976_v27, %v468_v37 }
 0x245   :  { %v543_v5 = vperm.slane %v496_v58, %v542_v57 }
 0x247   :  { %v545_v21 = vsel %vm544_vm5, %v543_v5, %v541_v13 }
 0x24a   :  { %v470_v39 = vpop.xlane.xlu0 %469 }
 0x24b   :  { %v497_v61 = vadd.f32 %v976_v27, %v470_v39 }
 0x24d   :  { %v547_v9 = vperm.slane %v497_v61, %v546_v60 }
 0x24f   :  { %v549_v25 = vsel %vm548_vm6, %v547_v9, %v545_v21 }
 0x252   :  { %v472_v40 = vpop.xlane.xlu1 %471 }
 0x253   :  { %v498_v0 = vadd.f32 %v976_v27, %v472_v40 }
 0x255   :  { %v551_v14 = vperm.slane %v498_v0, %v550_v63 }
 0x257   :  { %v553_v31 = vsel %vm552_vm7, %v551_v14, %v549_v25 }
 0x25a   :  { %v474_v41 = vpop.xlane.xlu2 %473 }
 0x25b   :  { %v499_v3 = vadd.f32 %v976_v27, %v474_v41 }
 0x25d   :  { %v555_v18 = vperm.slane %v499_v3, %v554_v2 }
 0x25f   :  { %v557_v33 = vsel %vm556_vm8, %v555_v18, %v553_v31 }
 0x262   :  { %v476_v48 = vpop.xlane.xlu0 %475 }
 0x263   :  { %v500_v7 = vadd.f32 %v976_v27, %v476_v48 }
 0x265   :  { %v559_v22 = vperm.slane %v500_v7, %v558_v6 }
 0x267   :  { %v561_v36 = vsel %vm560_vm9, %v559_v22, %v557_v33 }
 0x26a   :  { %v478_v50 = vpop.xlane.xlu1 %477 }
 0x26b   :  { %v501_v11 = vadd.f32 %v976_v27, %v478_v50 }
 0x26d   :  { %v563_v26 = vperm.slane %v501_v11, %v562_v10 }
 0x26f   :  { %v565_v39 = vsel %vm564_vm10, %v563_v26, %v561_v36 }
 0x272   :  { %v480_v53 = vpop.xlane.xlu2 %479 }
 0x273   :  { %v502_v16 = vadd.f32 %v976_v27, %v480_v53 }
 0x275   :  { %v567_v32 = vperm.slane %v502_v16, %v566_v15 }
 0x277   :  { %v569_v30 = vsel %vm568_vm11, %v567_v32, %v565_v39 }
 0x280   :  { %v482_v8 = vpop.xlane.xlu0 %481 }
 0x281   :  { %v503_v20 = vadd.f32 %v976_v27, %v482_v8 }
 0x283   :  { %v571_v35 = vperm.slane %v503_v20, %v570_v19 }
 0x285   :  { %v573_v44 = vsel %vm572_vm12, %v571_v35, %v569_v30 }
 0x288   :  { %v484_v12 = vpop.xlane.xlu1 %483 }
 0x289   :  { %v504_v24 = vadd.f32 %v976_v27, %v484_v12 }
 0x28b   :  { %v575_v37 = vperm.slane %v504_v24, %v574_v23 }
 0x28d   :  { %v577_v45 = vsel %vm576_vm13, %v575_v37, %v573_v44 }
 0x290   :  { %v486_v17 = vpop.xlane.xlu2 %485 }
 0x291   :  { %v505_v29 = vadd.f32 %v976_v27, %v486_v17 }
 0x293   :  { %v579_v40 = vperm.slane %v505_v29, %v578_v28 }
 0x295   :  { %v581_v46 = vsel %vm580_vm14, %v579_v40, %v577_v45 }
 0x298   :  { %v488_v41 = vpop.xlane.xlu0 %487 }
 0x299   :  { %v506_v43 = vadd.f32 %v976_v27, %v488_v41 }
 0x29b   :  { %v583_v34 = vperm.slane %v506_v43, %v582_v38 }
 0x29d   :  { %v585_v42 = vsel %vm584_vm15, %v583_v34, %v581_v46 }
 0x29e   :  { %587 = vst [vmem:[#allocation3] sm:$0x1] %v585_v42 }
 0x29f   :  { %598 = dma.vmem_to_hbm [thread:$0]  %s594_s18, 16, %s596_s21, [#allocation4]  }
 0x2a0   :  { %760 = dma.done.wait [#allocation4], 16  }
 0x2a1   :  { %761 = vsyncadd [#allocation4], 4294967280 }
 0x2a2   :  { %603 = vsyncpa [#allocation4], 1 }

// kernel: tpu_custom_call.1
= control target key start
LH: loop header
LB: loop body
LE: loop exit
PB: predicated region body
PF: predicated region fallthrough
CT: control target
= control target key end

     0   :  { %vm62_vm0 = vcmask 130048   ;;  %s1020_s0 = inlined_call_operand.vmem [shape: f32[128,16], index: 0, kind: input, shape index: {}]   ;;  %s1021_s1 = inlined_call_operand.vmem [shape: bf16[16,128], index: 1, kind: input, shape index: {}]   ;;  %s1022_s2 = inlined_call_operand.vmem [shape: f32[3,1,128], index: 2, kind: input, shape index: {}]   ;;  %s1023_s3 = inlined_call_operand.vmem [shape: bf16[2,128,128], index: 3, kind: input, shape index: {}]   ;;  %s1024_s4 = inlined_call_operand.vmem [shape: f32[1,128], index: 4, kind: input, shape index: {}]   ;;  %s1025_s5 = inlined_call_operand.<no memory space> [shape: f32[1], index: 5, kind: input, shape index: {}]   ;;  %s1026_s6 = inlined_call_operand.hbm [shape: f32[1,1,128], index: 6, kind: output, shape index: {}]  }
   0x1   :  { %v698_v0 = vld [vmem:[%s1021_s1] sm:$0xff]  ;;  %v27_v2 = vld [vmem:[%s1020_s0 + $0x8] sm:$0xff] }
   0x2   :  { %v26_v1 = vld [vmem:[%s1020_s0] sm:$0xff]  ;;  %94 = vmatpush.bf16.msra.mxu0 %v698_v0 }
   0x3   :  { %v42_v3 = vpack.c.bf16 %v27_v2, %v26_v1 }
   0x4   :  { %12 = vsyncpa [#allocation4], 0  ;;  %v28_v4 = vld [vmem:[%s1020_s0 + $0x10] sm:$0xff]  ;;  %v29_v5 = vld [vmem:[%s1020_s0 + $0x18] sm:$0xff]  ;;  %vm528_vm1 = vcmask 130112   ;;  %vm532_vm2 = vcmask 195712  }
   0x5   :  { %608 = vmatmul.msk.bf16.vlgmr.msra.gmra.mxu0 %vm62_vm0, %v42_v3  ;;  %v43_v6 = vpack.c.bf16 %v29_v5, %v28_v4  ;;  %v30_v7 = vld [vmem:[%s1020_s0 + $0x20] sm:$0xff]  ;;  %v31_v8 = vld [vmem:[%s1020_s0 + $0x28] sm:$0xff]  ;;  %v32_v10 = vld [vmem:[%s1020_s0 + $0x30] sm:$0xff]  ;;  %vm536_vm3 = vcmask 261312   ;;  %vm540_vm4 = vcmask 326912   ;;  %vm544_vm5 = vcmask 392512  }
   0x6   :  { %v44_v9 = vpack.c.bf16 %v31_v8, %v30_v7  ;;  %v33_v11 = vld [vmem:[%s1020_s0 + $0x38] sm:$0xff]  ;;  %v34_v13 = vld [vmem:[%s1020_s0 + $0x40] sm:$0xff]  ;;  %v35_v14 = vld [vmem:[%s1020_s0 + $0x48] sm:$0xff]  ;;  %vm548_vm6 = vcmask 458112   ;;  %vm552_vm7 = vcmask 523712   ;;  %vm556_vm8 = vcmask 589312  }
   0x7   :  { %v45_v12 = vpack.c.bf16 %v33_v11, %v32_v10  ;;  %v46_v15 = vpack.c.bf16 %v35_v14, %v34_v13  ;;  %v706_v16 = vld [vmem:[%s1023_s3 + $0x38] sm:$0xff]  ;;  %v36_v17 = vld [vmem:[%s1020_s0 + $0x50] sm:$0xff]  ;;  %v704_v21 = vld [vmem:[%s1023_s3 + $0x28] sm:$0xff]  ;;  %vm560_vm9 = vcmask 654912   ;;  %vm564_vm10 = vcmask 720512   ;;  %s595_s21 = sshll.u32 %s1026_s6, 4  ;;  %s596_s21 = int_to_ptr.hbm [resolvable:$true] %s595_s21 }
   0x8   :  { %229 = vmatpush.bf16.msra.mxu1 %v706_v16  ;;  %715 = vmatpush.bf16.msra.mxu3 %v706_v16  ;;  %v37_v18 = vld [vmem:[%s1020_s0 + $0x58] sm:$0xff]  ;;  %v705_v20 = vld [vmem:[%s1023_s3 + $0x30] sm:$0xff]  ;;  %v703_v22 = vld [vmem:[%s1023_s3 + $0x20] sm:$0xff]  ;;  %vm568_vm11 = vcmask 786112   ;;  %vm572_vm12 = vcmask 851712   ;;  %vm576_vm13 = vcmask 917312  }
   0x9   :  { %v47_v19 = vpack.c.bf16 %v37_v18, %v36_v17  ;;  %v38_v23 = vld [vmem:[%s1020_s0 + $0x60] sm:$0xff]  ;;  %v39_v24 = vld [vmem:[%s1020_s0 + $0x68] sm:$0xff]  ;;  %v702_v25 = vld [vmem:[%s1023_s3 + $0x18] sm:$0xff]  ;;  %vm580_vm14 = vcmask 982912   ;;  %vm584_vm15 = vcmask 1048512  }
   0xa   :  { %v48_v26 = vpack.c.bf16 %v39_v24, %v38_v23  ;;  %v701_v27 = vld [vmem:[%s1023_s3 + $0x10] sm:$0xff]  ;;  %v700_v28 = vld [vmem:[%s1023_s3 + $0x8] sm:$0xff]  ;;  %v699_v29 = vld [vmem:[%s1023_s3] sm:$0xff] }
   0xb   :  { %v40_v30 = vld [vmem:[%s1020_s0 + $0x70] sm:$0xff]  ;;  %v41_v31 = vld [vmem:[%s1020_s0 + $0x78] sm:$0xff]  ;;  %v884_v34 = vld [vmem:[%s1022_s2] ss:$0 sm:$0xff] }
   0xc   :  { %230 = vmatpush.bf16.msra.mxu1 %v705_v20  ;;  %716 = vmatpush.bf16.msra.mxu3 %v705_v20  ;;  %v49_v32 = vpack.c.bf16 %v41_v31, %v40_v30  ;;  %v713_v13 = vld [vmem:[%s1023_s3 + $0x70] sm:$0xff]  ;;  %v711_v16 = vld [vmem:[%s1023_s3 + $0x60] sm:$0xff]  ;;  %v710_v20 = vld [vmem:[%s1023_s3 + $0x58] sm:$0xff] }
   0xd   :  { %v709_v24 = vld [vmem:[%s1023_s3 + $0x50] sm:$0xff] }
  0x10   :  { %231 = vmatpush.bf16.msra.mxu1 %v704_v21  ;;  %717 = vmatpush.bf16.msra.mxu3 %v704_v21 }
  0x14   :  { %232 = vmatpush.bf16.msra.mxu1 %v703_v22  ;;  %718 = vmatpush.bf16.msra.mxu3 %v703_v22 }
  0x15   :  { %609 = vmatmul.msk.bf16.gmra.mxu0 %vm62_vm0, %v43_v6 }
  0x18   :  { %233 = vmatpush.bf16.msra.mxu1 %v702_v25  ;;  %719 = vmatpush.bf16.msra.mxu3 %v702_v25 }
  0x1c   :  { %234 = vmatpush.bf16.msra.mxu1 %v701_v27  ;;  %720 = vmatpush.bf16.msra.mxu3 %v701_v27  ;;  %v707_v27 = vld [vmem:[%s1023_s3 + $0x40] sm:$0xff] }
  0x20   :  { %235 = vmatpush.bf16.msra.mxu1 %v700_v28  ;;  %721 = vmatpush.bf16.msra.mxu3 %v700_v28 }
  0x24   :  { %236 = vmatpush.bf16.msra.mxu1 %v699_v29  ;;  %722 = vmatpush.bf16.msra.mxu3 %v699_v29 }
  0x25   :  { %610 = vmatmul.msk.bf16.gmra.mxu0 %vm62_vm0, %v44_v9  ;;  %v714_v9 = vld [vmem:[%s1023_s3 + $0x78] sm:$0xff] }
  0x26   :  { %372 = vmatpush.bf16.msra.mxu2 %v714_v9 }
  0x28   :  { %723 = vmatpush.bf16.msrb.mxu3 %v714_v9 }
  0x2a   :  { %373 = vmatpush.bf16.msra.mxu2 %v713_v13 }
  0x2c   :  { %724 = vmatpush.bf16.msrb.mxu3 %v713_v13 }
  0x35   :  { %611 = vmatmul.msk.bf16.gmra.mxu0 %vm62_vm0, %v45_v12 }
  0x45   :  { %612 = vmatmul.msk.bf16.gmra.mxu0 %vm62_vm0, %v46_v15  ;;  %v712_v15 = vld [vmem:[%s1023_s3 + $0x68] sm:$0xff] }
  0x46   :  { %374 = vmatpush.bf16.msra.mxu2 %v712_v15  ;;  %725 = vmatpush.bf16.msrb.mxu3 %v712_v15 }
  0x4a   :  { %375 = vmatpush.bf16.msra.mxu2 %v711_v16  ;;  %726 = vmatpush.bf16.msrb.mxu3 %v711_v16 }
  0x4e   :  { %376 = vmatpush.bf16.msra.mxu2 %v710_v20  ;;  %727 = vmatpush.bf16.msrb.mxu3 %v710_v20 }
  0x52   :  { %377 = vmatpush.bf16.msra.mxu2 %v709_v24  ;;  %728 = vmatpush.bf16.msrb.mxu3 %v709_v24 }
  0x55   :  { %613 = vmatmul.msk.bf16.gmra.mxu0 %vm62_vm0, %v47_v19 }
  0x65   :  { %614 = vmatmul.msk.bf16.gmra.mxu0 %vm62_vm0, %v48_v26  ;;  %v708_v26 = vld [vmem:[%s1023_s3 + $0x48] sm:$0xff] }
  0x66   :  { %378 = vmatpush.bf16.msra.mxu2 %v708_v26  ;;  %729 = vmatpush.bf16.msrb.mxu3 %v708_v26 }
  0x6a   :  { %379 = vmatpush.bf16.msra.mxu2 %v707_v27  ;;  %730 = vmatpush.bf16.msrb.mxu3 %v707_v27  ;;  %v932_v27 = vld [vmem:[%s1022_s2 + $0x2] ss:$0 sm:$0xff] }
  0x75   :  { %615 = vmatmul.msk.bf16.gmra.mxu0 %vm62_vm0, %v49_v32 }
  0x82   :  { %v96_v33 = vpop.f32.mrf.mxu0 }
  0x83   :  { %v97_v35 = vadd.f32 %v884_v34, %v96_v33 }
  0x85   :  { %v136_v38 = vmax.f32 %v97_v35, 0.0 }
  0x8a   :  { %v98_v36 = vpop.f32.mrf.mxu0 }
  0x8b   :  { %v99_v37 = vadd.f32 %v884_v34, %v98_v36  ;;  %v733_v36 = vld [vmem:[%s1022_s2 + $0x1] ss:$0 sm:$0xff] }
  0x8d   :  { %v137_v39 = vmax.f32 %v99_v37, 0.0 }
  0x8f   :  { %v152_v40 = vpack.c.bf16 %v137_v39, %v136_v38 }
  0x91   :  { %237 = vmatmul.bf16.vlgmr.msra.gmra.mxu1 %v152_v40 }
  0x92   :  { %v101_v41 = vpop.f32.mrf.mxu0 }
  0x93   :  { %v102_v42 = vadd.f32 %v884_v34, %v101_v41 }
  0x95   :  { %v138_v45 = vmax.f32 %v102_v42, 0.0 }
  0x9a   :  { %v103_v43 = vpop.f32.mrf.mxu0 }
  0x9b   :  { %v104_v44 = vadd.f32 %v884_v34, %v103_v43 }
  0x9d   :  { %v139_v46 = vmax.f32 %v104_v44, 0.0 }
  0x9f   :  { %v153_v47 = vpack.c.bf16 %v139_v46, %v138_v45 }
  0xa1   :  { %242 = vmatmul.bf16.gmra.mxu1 %v153_v47 }
  0xa2   :  { %v106_v48 = vpop.f32.mrf.mxu0 }
  0xa3   :  { %v107_v49 = vadd.f32 %v884_v34, %v106_v48 }
  0xa5   :  { %v140_v52 = vmax.f32 %v107_v49, 0.0 }
  0xaa   :  { %v108_v50 = vpop.f32.mrf.mxu0 }
  0xab   :  { %v109_v51 = vadd.f32 %v884_v34, %v108_v50 }
  0xad   :  { %v141_v53 = vmax.f32 %v109_v51, 0.0 }
  0xaf   :  { %v154_v54 = vpack.c.bf16 %v141_v53, %v140_v52 }
  0xb1   :  { %247 = vmatmul.bf16.gmra.mxu1 %v154_v54 }
  0xb2   :  { %v111_v55 = vpop.f32.mrf.mxu0 }
  0xb3   :  { %v112_v56 = vadd.f32 %v884_v34, %v111_v55 }
  0xb5   :  { %v142_v59 = vmax.f32 %v112_v56, 0.0 }
  0xba   :  { %v113_v57 = vpop.f32.mrf.mxu0 }
  0xbb   :  { %v114_v58 = vadd.f32 %v884_v34, %v113_v57 }
  0xbd   :  { %v143_v60 = vmax.f32 %v114_v58, 0.0 }
  0xbf   :  { %v155_v61 = vpack.c.bf16 %v143_v60, %v142_v59 }
  0xc1   :  { %252 = vmatmul.bf16.gmra.mxu1 %v155_v61 }
  0xc2   :  { %v116_v62 = vpop.f32.mrf.mxu0 }
  0xc3   :  { %v117_v63 = vadd.f32 %v884_v34, %v116_v62 }
  0xc5   :  { %v144_v2 = vmax.f32 %v117_v63, 0.0 }
  0xca   :  { %v118_v0 = vpop.f32.mrf.mxu0 }
  0xcb   :  { %v119_v1 = vadd.f32 %v884_v34, %v118_v0 }
  0xcd   :  { %v145_v3 = vmax.f32 %v119_v1, 0.0 }
  0xcf   :  { %v156_v4 = vpack.c.bf16 %v145_v3, %v144_v2 }
  0xd1   :  { %257 = vmatmul.bf16.gmra.mxu1 %v156_v4 }
  0xd2   :  { %v121_v5 = vpop.f32.mrf.mxu0 }
  0xd3   :  { %v122_v6 = vadd.f32 %v884_v34, %v121_v5 }
  0xd5   :  { %v146_v10 = vmax.f32 %v122_v6, 0.0 }
  0xda   :  { %v123_v7 = vpop.f32.mrf.mxu0 }
  0xdb   :  { %v124_v8 = vadd.f32 %v884_v34, %v123_v7 }
  0xdd   :  { %v147_v11 = vmax.f32 %v124_v8, 0.0 }
  0xdf   :  { %v157_v12 = vpack.c.bf16 %v147_v11, %v146_v10 }
  0xe1   :  { %262 = vmatmul.bf16.gmra.mxu1 %v157_v12 }
  0xe2   :  { %v126_v14 = vpop.f32.mrf.mxu0 }
  0xe3   :  { %v127_v17 = vadd.f32 %v884_v34, %v126_v14 }
  0xe5   :  { %v148_v21 = vmax.f32 %v127_v17, 0.0 }
  0xea   :  { %v128_v18 = vpop.f32.mrf.mxu0 }
  0xeb   :  { %v129_v19 = vadd.f32 %v884_v34, %v128_v18 }
  0xed   :  { %v149_v22 = vmax.f32 %v129_v19, 0.0 }
  0xef   :  { %v158_v23 = vpack.c.bf16 %v149_v22, %v148_v21 }
  0xf1   :  { %267 = vmatmul.bf16.vlgmr.msra.gmra.mxu3 %v158_v23 }
  0xf2   :  { %v131_v25 = vpop.f32.mrf.mxu0 }
  0xf3   :  { %v132_v28 = vadd.f32 %v884_v34, %v131_v25 }
  0xf5   :  { %v150_v31 = vmax.f32 %v132_v28, 0.0 }
  0xfa   :  { %v133_v29 = vpop.f32.mrf.mxu0 }
  0xfb   :  { %v134_v30 = vadd.f32 %v884_v34, %v133_v29 }
  0xfd   :  { %v151_v32 = vmax.f32 %v134_v30, 0.0  ;;  %v938_v30 = vld [vmem:[%s1024_s4] ss:$0 sm:$0xff] }
  0xff   :  { %v159_v33 = vpack.c.bf16 %v151_v32, %v150_v31 }
 0x101   :  { %272 = vmatmul.bf16.gmra.mxu3 %v159_v33 }
 0x10e   :  { %v238_v35 = vpop.f32.mrf.mxu1 }
 0x10f   :  { %v239_v37 = vadd.f32 %v733_v36, %v238_v35 }
 0x111   :  { %v278_v40 = vmax.f32 %v239_v37, 0.0 }
 0x116   :  { %v240_v38 = vpop.f32.mrf.mxu1 }
 0x117   :  { %v241_v39 = vadd.f32 %v733_v36, %v240_v38 }
 0x119   :  { %v279_v41 = vmax.f32 %v241_v39, 0.0 }
 0x11b   :  { %v294_v42 = vpack.c.bf16 %v279_v41, %v278_v40 }
 0x11d   :  { %380 = vmatmul.bf16.vlgmr.msra.gmra.mxu2 %v294_v42 }
 0x11e   :  { %v243_v43 = vpop.f32.mrf.mxu1 }
 0x11f   :  { %v244_v44 = vadd.f32 %v733_v36, %v243_v43 }
 0x121   :  { %v280_v46 = vmax.f32 %v244_v44, 0.0 }
 0x126   :  { %v245_v45 = vpop.f32.mrf.mxu1 }
 0x127   :  { %v246_v34 = vadd.f32 %v733_v36, %v245_v45 }
 0x129   :  { %v281_v47 = vmax.f32 %v246_v34, 0.0 }
 0x12b   :  { %v295_v48 = vpack.c.bf16 %v281_v47, %v280_v46 }
 0x12d   :  { %385 = vmatmul.bf16.gmra.mxu2 %v295_v48 }
 0x12e   :  { %v248_v49 = vpop.f32.mrf.mxu1 }
 0x12f   :  { %v249_v50 = vadd.f32 %v733_v36, %v248_v49 }
 0x131   :  { %v282_v53 = vmax.f32 %v249_v50, 0.0 }
 0x136   :  { %v250_v51 = vpop.f32.mrf.mxu1 }
 0x137   :  { %v251_v52 = vadd.f32 %v733_v36, %v250_v51 }
 0x139   :  { %v283_v54 = vmax.f32 %v251_v52, 0.0 }
 0x13b   :  { %v296_v55 = vpack.c.bf16 %v283_v54, %v282_v53 }
 0x13d   :  { %390 = vmatmul.bf16.gmra.mxu2 %v296_v55 }
 0x13e   :  { %v253_v56 = vpop.f32.mrf.mxu1 }
 0x13f   :  { %v254_v57 = vadd.f32 %v733_v36, %v253_v56 }
 0x141   :  { %v284_v60 = vmax.f32 %v254_v57, 0.0 }
 0x146   :  { %v255_v58 = vpop.f32.mrf.mxu1 }
 0x147   :  { %v256_v59 = vadd.f32 %v733_v36, %v255_v58 }
 0x149   :  { %v285_v61 = vmax.f32 %v256_v59, 0.0 }
 0x14b   :  { %v297_v62 = vpack.c.bf16 %v285_v61, %v284_v60 }
 0x14d   :  { %395 = vmatmul.bf16.gmra.mxu2 %v297_v62 }
 0x14e   :  { %v258_v63 = vpop.f32.mrf.mxu1 }
 0x14f   :  { %v259_v0 = vadd.f32 %v733_v36, %v258_v63 }
 0x151   :  { %v286_v3 = vmax.f32 %v259_v0, 0.0 }
 0x156   :  { %v260_v1 = vpop.f32.mrf.mxu1 }
 0x157   :  { %v261_v2 = vadd.f32 %v733_v36, %v260_v1 }
 0x159   :  { %v287_v4 = vmax.f32 %v261_v2, 0.0 }
 0x15b   :  { %v298_v5 = vpack.c.bf16 %v287_v4, %v286_v3 }
 0x15d   :  { %400 = vmatmul.bf16.gmra.mxu2 %v298_v5 }
 0x15e   :  { %v263_v6 = vpop.f32.mrf.mxu1 }
 0x15f   :  { %v264_v7 = vadd.f32 %v733_v36, %v263_v6 }
 0x161   :  { %v288_v10 = vmax.f32 %v264_v7, 0.0 }
 0x166   :  { %v265_v8 = vpop.f32.mrf.mxu1 }
 0x167   :  { %v266_v9 = vadd.f32 %v733_v36, %v265_v8 }
 0x169   :  { %v289_v11 = vmax.f32 %v266_v9, 0.0 }
 0x16b   :  { %v299_v12 = vpack.c.bf16 %v289_v11, %v288_v10 }
 0x16d   :  { %405 = vmatmul.bf16.gmra.mxu2 %v299_v12 }
 0x174   :  { %v268_v13 = vpop.f32.mrf.mxu3 }
 0x175   :  { %v269_v14 = vadd.f32 %v733_v36, %v268_v13 }
 0x177   :  { %v290_v17 = vmax.f32 %v269_v14, 0.0 }
 0x17c   :  { %v270_v15 = vpop.f32.mrf.mxu3 }
 0x17d   :  { %v271_v16 = vadd.f32 %v733_v36, %v270_v15 }
 0x17f   :  { %v291_v18 = vmax.f32 %v271_v16, 0.0 }
 0x181   :  { %v300_v19 = vpack.c.bf16 %v291_v18, %v290_v17 }
 0x183   :  { %410 = vmatmul.bf16.vlgmr.msrb.gmra.mxu3 %v300_v19 }
 0x184   :  { %v273_v20 = vpop.f32.mrf.mxu3 }
 0x185   :  { %v274_v21 = vadd.f32 %v733_v36, %v273_v20 }
 0x187   :  { %v292_v24 = vmax.f32 %v274_v21, 0.0 }
 0x18c   :  { %v275_v22 = vpop.f32.mrf.mxu3 }
 0x18d   :  { %v276_v23 = vadd.f32 %v733_v36, %v275_v22 }
 0x18f   :  { %v293_v25 = vmax.f32 %v276_v23, 0.0 }
 0x191   :  { %v301_v26 = vpack.c.bf16 %v293_v25, %v292_v24 }
 0x193   :  { %415 = vmatmul.bf16.gmra.mxu3 %v301_v26 }
 0x1a0   :  { %v381_v28 = vpop.f32.mrf.mxu2 }
 0x1a1   :  { %v382_v29 = vadd.f32 %v932_v27, %v381_v28 }
 0x1a3   :  { %v421_v31 = vmax.f32 %v382_v29, 0.0 }
 0x1a5   :  { %v441_v32 = vmul.f32 %v938_v30, %v421_v31 }
 0x1a7   :  { %457 = vadd.xlane.f32.xlu0 %v441_v32 }
 0x1a8   :  { %v383_v33 = vpop.f32.mrf.mxu2 }
 0x1a9   :  { %v384_v35 = vadd.f32 %v932_v27, %v383_v33 }
 0x1ab   :  { %v422_v36 = vmax.f32 %v384_v35, 0.0 }
 0x1ad   :  { %v442_v37 = vmul.f32 %v938_v30, %v422_v36 }
 0x1af   :  { %459 = vadd.xlane.f32.xlu0 %v442_v37 }
 0x1b0   :  { %v386_v38 = vpop.f32.mrf.mxu2 }
 0x1b1   :  { %v387_v39 = vadd.f32 %v932_v27, %v386_v38  ;;  %v523_v38 = vlaneseq }
 0x1b3   :  { %v423_v40 = vmax.f32 %v387_v39, 0.0 }
 0x1b5   :  { %v443_v41 = vmul.f32 %v938_v30, %v423_v40 }
 0x1b7   :  { %461 = vadd.xlane.f32.xlu1 %v443_v41 }
 0x1b8   :  { %v388_v42 = vpop.f32.mrf.mxu2 }
 0x1b9   :  { %v389_v43 = vadd.f32 %v932_v27, %v388_v42  ;;  %v971_v42 = vand.u32 127, %v523_v38 }
 0x1bb   :  { %v424_v44 = vmax.f32 %v389_v43, 0.0  ;;  %v582_v38 = vadd.s32 4294967176, %v971_v42 }
 0x1bd   :  { %v444_v45 = vmul.f32 %v938_v30, %v424_v44 }
 0x1bf   :  { %463 = vadd.xlane.f32.xlu1 %v444_v45  ;;  %v530_v45 = vadd.s32 4294967280, %v971_v42 }
 0x1c0   :  { %v391_v34 = vpop.f32.mrf.mxu2 }
 0x1c1   :  { %v392_v46 = vadd.f32 %v932_v27, %v391_v34 }
 0x1c3   :  { %v425_v47 = vmax.f32 %v392_v46, 0.0  ;;  %v534_v46 = vadd.s32 4294967272, %v971_v42 }
 0x1c5   :  { %v445_v48 = vmul.f32 %v938_v30, %v425_v47 }
 0x1c7   :  { %465 = vadd.xlane.f32.xlu2 %v445_v48 }
 0x1c8   :  { %v393_v49 = vpop.f32.mrf.mxu2 }
 0x1c9   :  { %v394_v50 = vadd.f32 %v932_v27, %v393_v49 }
 0x1cb   :  { %v426_v51 = vmax.f32 %v394_v50, 0.0 }
 0x1cd   :  { %v446_v52 = vmul.f32 %v938_v30, %v426_v51  ;;  %v538_v51 = vadd.s32 4294967264, %v971_v42 }
 0x1cf   :  { %467 = vadd.xlane.f32.xlu2 %v446_v52 }
 0x1d0   :  { %v396_v53 = vpop.f32.mrf.mxu2 }
 0x1d1   :  { %v397_v54 = vadd.f32 %v932_v27, %v396_v53 }
 0x1d3   :  { %v427_v55 = vmax.f32 %v397_v54, 0.0 }
 0x1d5   :  { %v447_v56 = vmul.f32 %v938_v30, %v427_v55 }
 0x1d7   :  { %469 = vadd.xlane.f32.xlu0 %v447_v56 }
 0x1d8   :  { %v398_v57 = vpop.f32.mrf.mxu2 }
 0x1d9   :  { %v399_v58 = vadd.f32 %v932_v27, %v398_v57  ;;  %v542_v57 = vadd.s32 4294967256, %v971_v42 }
 0x1db   :  { %v428_v59 = vmax.f32 %v399_v58, 0.0 }
 0x1dd   :  { %v448_v60 = vmul.f32 %v938_v30, %v428_v59 }
 0x1df   :  { %471 = vadd.xlane.f32.xlu1 %v448_v60  ;;  %v546_v60 = vadd.s32 4294967248, %v971_v42 }
 0x1e0   :  { %v401_v61 = vpop.f32.mrf.mxu2 }
 0x1e1   :  { %v402_v62 = vadd.f32 %v932_v27, %v401_v61 }
 0x1e3   :  { %v429_v63 = vmax.f32 %v402_v62, 0.0 }
 0x1e5   :  { %v449_v0 = vmul.f32 %v938_v30, %v429_v63  ;;  %v550_v63 = vadd.s32 4294967240, %v971_v42 }
 0x1e7   :  { %473 = vadd.xlane.f32.xlu2 %v449_v0 }
 0x1e8   :  { %v403_v1 = vpop.f32.mrf.mxu2 }
 0x1e9   :  { %v404_v2 = vadd.f32 %v932_v27, %v403_v1 }
 0x1eb   :  { %v430_v3 = vmax.f32 %v404_v2, 0.0  ;;  %v554_v2 = vadd.s32 4294967232, %v971_v42 }
 0x1ed   :  { %v450_v4 = vmul.f32 %v938_v30, %v430_v3 }
 0x1ef   :  { %475 = vadd.xlane.f32.xlu0 %v450_v4 }
 0x1f0   :  { %v406_v5 = vpop.f32.mrf.mxu2 }
 0x1f1   :  { %v407_v6 = vadd.f32 %v932_v27, %v406_v5 }
 0x1f3   :  { %v431_v7 = vmax.f32 %v407_v6, 0.0  ;;  %v558_v6 = vadd.s32 4294967224, %v971_v42 }
 0x1f5   :  { %v451_v8 = vmul.f32 %v938_v30, %v431_v7 }
 0x1f7   :  { %477 = vadd.xlane.f32.xlu1 %v451_v8 }
 0x1f8   :  { %v408_v9 = vpop.f32.mrf.mxu2 }
 0x1f9   :  { %v409_v10 = vadd.f32 %v932_v27, %v408_v9 }
 0x1fb   :  { %v432_v11 = vmax.f32 %v409_v10, 0.0  ;;  %v562_v10 = vadd.s32 4294967216, %v971_v42 }
 0x1fd   :  { %v452_v12 = vmul.f32 %v938_v30, %v432_v11 }
 0x1ff   :  { %479 = vadd.xlane.f32.xlu2 %v452_v12 }
 0x206   :  { %v411_v13 = vpop.f32.mrf.mxu3 }
 0x207   :  { %v412_v14 = vadd.f32 %v932_v27, %v411_v13 }
 0x209   :  { %v433_v15 = vmax.f32 %v412_v14, 0.0 }
 0x20b   :  { %v453_v16 = vmul.f32 %v938_v30, %v433_v15  ;;  %v566_v15 = vadd.s32 4294967208, %v971_v42 }
 0x20d   :  { %481 = vadd.xlane.f32.xlu0 %v453_v16 }
 0x20e   :  { %v413_v17 = vpop.f32.mrf.mxu3 }
 0x20f   :  { %v414_v18 = vadd.f32 %v932_v27, %v413_v17 }
 0x211   :  { %v434_v19 = vmax.f32 %v414_v18, 0.0 }
 0x213   :  { %v454_v20 = vmul.f32 %v938_v30, %v434_v19  ;;  %v570_v19 = vadd.s32 4294967200, %v971_v42 }
 0x215   :  { %483 = vadd.xlane.f32.xlu1 %v454_v20 }
 0x216   :  { %v416_v21 = vpop.f32.mrf.mxu3 }
 0x217   :  { %v417_v22 = vadd.f32 %v932_v27, %v416_v21 }
 0x219   :  { %v435_v23 = vmax.f32 %v417_v22, 0.0 }
 0x21a   :  { %v458_v31 = vpop.xlane.xlu0 %457 }
 0x21b   :  { %v455_v24 = vmul.f32 %v938_v30, %v435_v23  ;;  %v574_v23 = vadd.s32 4294967192, %v971_v42 }
 0x21d   :  { %485 = vadd.xlane.f32.xlu2 %v455_v24 }
 0x21e   :  { %v418_v25 = vpop.f32.mrf.mxu3 }
 0x21f   :  { %v419_v26 = vadd.f32 %v932_v27, %v418_v25  ;;  %v976_v27 = vstv %s1025_s5  ;;  %s762_s5 = smov [#allocation3]  }
 0x220   :  { %v491_v44 = vadd.f32 %v976_v27, %v458_v31  ;;  %s593_s18 = sshll.u32 %s762_s5, 4  ;;  %s594_s18 = int_to_ptr.vmem [resolvable:$true] %s593_s18 }
 0x221   :  { %v436_v28 = vmax.f32 %v419_v26, 0.0 }
 0x222   :  { %v460_v35 = vpop.xlane.xlu0 %459  ;;  %v525_v54 = vperm.slane %v491_v44, %v971_v42 }
 0x223   :  { %v456_v29 = vmul.f32 %v938_v30, %v436_v28  ;;  %v526_v30 = vadd.s32 4294967288, %v971_v42  ;;  %v492_v43 = vadd.f32 %v976_v27, %v460_v35  ;;  %v578_v28 = vadd.s32 4294967184, %v971_v42 }
 0x225   :  { %487 = vadd.xlane.f32.xlu0 %v456_v29  ;;  %v527_v49 = vperm.slane %v492_v43, %v526_v30 }
 0x227   :  { %v529_v59 = vsel %vm528_vm1, %v527_v49, %v525_v54 }
 0x22a   :  { %v462_v32 = vpop.xlane.xlu1 %461 }
 0x22b   :  { %v493_v34 = vadd.f32 %v976_v27, %v462_v32 }
 0x22d   :  { %v531_v55 = vperm.slane %v493_v34, %v530_v45 }
 0x22f   :  { %v533_v1 = vsel %vm532_vm2, %v531_v55, %v529_v59 }
 0x232   :  { %v464_v36 = vpop.xlane.xlu1 %463 }
 0x233   :  { %v494_v47 = vadd.f32 %v976_v27, %v464_v36 }
 0x235   :  { %v535_v56 = vperm.slane %v494_v47, %v534_v46 }
 0x237   :  { %v537_v4 = vsel %vm536_vm3, %v535_v56, %v533_v1 }
 0x23a   :  { %v466_v33 = vpop.xlane.xlu2 %465 }
 0x23b   :  { %v495_v52 = vadd.f32 %v976_v27, %v466_v33 }
 0x23d   :  { %v539_v62 = vperm.slane %v495_v52, %v538_v51 }
 0x23f   :  { %v541_v13 = vsel %vm540_vm4, %v539_v62, %v537_v4 }
 0x242   :  { %v468_v37 = vpop.xlane.xlu2 %467 }
 0x243   :  { %v496_v58 = vadd.f32 %v976_v27, %v468_v37 }
 0x245   :  { %v543_v5 = vperm.slane %v496_v58, %v542_v57 }
 0x247   :  { %v545_v21 = vsel %vm544_vm5, %v543_v5, %v541_v13 }
 0x24a   :  { %v470_v39 = vpop.xlane.xlu0 %469 }
 0x24b   :  { %v497_v61 = vadd.f32 %v976_v27, %v470_v39 }
 0x24d   :  { %v547_v9 = vperm.slane %v497_v61, %v546_v60 }
 0x24f   :  { %v549_v25 = vsel %vm548_vm6, %v547_v9, %v545_v21 }
 0x252   :  { %v472_v40 = vpop.xlane.xlu1 %471 }
 0x253   :  { %v498_v0 = vadd.f32 %v976_v27, %v472_v40 }
 0x255   :  { %v551_v14 = vperm.slane %v498_v0, %v550_v63 }
 0x257   :  { %v553_v31 = vsel %vm552_vm7, %v551_v14, %v549_v25 }
 0x25a   :  { %v474_v41 = vpop.xlane.xlu2 %473 }
 0x25b   :  { %v499_v3 = vadd.f32 %v976_v27, %v474_v41 }
 0x25d   :  { %v555_v18 = vperm.slane %v499_v3, %v554_v2 }
 0x25f   :  { %v557_v33 = vsel %vm556_vm8, %v555_v18, %v553_v31 }
 0x262   :  { %v476_v48 = vpop.xlane.xlu0 %475 }
 0x263   :  { %v500_v7 = vadd.f32 %v976_v27, %v476_v48 }
 0x265   :  { %v559_v22 = vperm.slane %v500_v7, %v558_v6 }
 0x267   :  { %v561_v36 = vsel %vm560_vm9, %v559_v22, %v557_v33 }
 0x26a   :  { %v478_v50 = vpop.xlane.xlu1 %477 }
 0x26b   :  { %v501_v11 = vadd.f32 %v976_v27, %v478_v50 }
 0x26d   :  { %v563_v26 = vperm.slane %v501_v11, %v562_v10 }
 0x26f   :  { %v565_v39 = vsel %vm564_vm10, %v563_v26, %v561_v36 }
 0x272   :  { %v480_v53 = vpop.xlane.xlu2 %479 }
 0x273   :  { %v502_v16 = vadd.f32 %v976_v27, %v480_v53 }
 0x275   :  { %v567_v32 = vperm.slane %v502_v16, %v566_v15 }
 0x277   :  { %v569_v30 = vsel %vm568_vm11, %v567_v32, %v565_v39 }
 0x280   :  { %v482_v8 = vpop.xlane.xlu0 %481 }
 0x281   :  { %v503_v20 = vadd.f32 %v976_v27, %v482_v8 }
 0x283   :  { %v571_v35 = vperm.slane %v503_v20, %v570_v19 }
 0x285   :  { %v573_v44 = vsel %vm572_vm12, %v571_v35, %v569_v30 }
 0x288   :  { %v484_v12 = vpop.xlane.xlu1 %483 }
 0x289   :  { %v504_v24 = vadd.f32 %v976_v27, %v484_v12 }
 0x28b   :  { %v575_v37 = vperm.slane %v504_v24, %v574_v23 }
 0x28d   :  { %v577_v45 = vsel %vm576_vm13, %v575_v37, %v573_v44 }
 0x290   :  { %v486_v17 = vpop.xlane.xlu2 %485 }
 0x291   :  { %v505_v29 = vadd.f32 %v976_v27, %v486_v17 }
 0x293   :  { %v579_v40 = vperm.slane %v505_v29, %v578_v28 }
 0x295   :  { %v581_v46 = vsel %vm580_vm14, %v579_v40, %v577_v45 }
 0x298   :  { %v488_v41 = vpop.xlane.xlu0 %487 }
 0x299   :  { %v506_v43 = vadd.f32 %v976_v27, %v488_v41 }
 0x29b   :  { %v583_v34 = vperm.slane %v506_v43, %v582_v38 }
 0x29d   :  { %v585_v42 = vsel %vm584_vm15, %v583_v34, %v581_v46 }
 0x29e   :  { %587 = vst [vmem:[#allocation3] sm:$0x1] %v585_v42 }
 0x29f   :  { %598 = dma.vmem_to_hbm [thread:$0]  %s594_s18, 16, %s596_s21, [#allocation4]  }
 0x2a0   :  { %760 = dma.done.wait [#allocation4], 16  }
 0x2a1   :  { %761 = vsyncadd [#allocation4], 4294967280 }
 0x2a2   :  { %603 = vsyncpa [#allocation4], 1 }

</bundles_post_ra>
